<compile_context>
chip_gen: v7x
topology: tpu7x:2x2x1
jax: 0.10.0
libtpu: 0.0.40
codegen_flags: <defaults>
</compile_context>

<pallas_src>
import jax
import jax.numpy as jnp
from jax.experimental import pallas as pl
from jax.experimental.pallas import tpu as pltpu


def _round_up(x, m):
    return ((x + m - 1) // m) * m


def _divisors(n):
    return [d for d in range(1, n + 1) if n % d == 0]


def _physical_vmem_bytes():
    """Per-core physical VMEM, with a conservative (v7x-sized) fallback."""
    try:
        info = pltpu.get_tpu_info()
        for name in ("vmem_capacity_bytes", "vmem_size_bytes", "vmem_bytes"):
            v = getattr(info, name, None)
            if v:
                return int(v)
    except Exception:
        pass
    return 64 * 1024 * 1024  # v7x per-TensorCore size: safe lower bound


def _choose_tiles(B, C, HW, HoWo, s, itemsize, budget_bytes):
    """Pick (b_t, c_t) so 2*in + 2*out blocks + scratch fit `budget_bytes`."""
    sub_tile = 8 * max(1, 4 // itemsize)      # 8 (f32) / 16 (bf16) / 32 (i8)
    lane = lambda n: _round_up(n, 128)
    sub = lambda n: _round_up(n, sub_tile)

    def need(b_t, c_t):
        in_blk = b_t * sub(c_t) * lane(HW) * itemsize
        out_blk = b_t * s * s * sub(c_t) * lane(HoWo) * itemsize
        xt = sub(HW) * lane(c_t) * itemsize
        g = sub(HoWo) * lane(c_t) * itemsize
        return 2 * in_blk + 2 * out_blk + xt + g     # x2 = double-buffered

    # Channel-tile candidates: sublane-tile multiples dividing C (capped at 128
    # to bound the live vreg footprint of the transposes), plus full C.
    c_cands = sorted({d for d in _divisors(C)
                      if d % sub_tile == 0 and d <= 128} | {C})
    b_cands = _divisors(B)

    fitting = [(b_t, c_t) for c_t in c_cands for b_t in b_cands
               if need(b_t, c_t) <= budget_bytes]
    if not fitting:
        # Pathological (huge H*W): take the smallest legal block; the caller
        # clamps vmem_limit_bytes below physical VMEM.
        fitting = [(1, min(c_cands))]

    total_bytes = 2 * B * C * HW * itemsize

    def score(bc):
        b_t, c_t = bc
        steps = (B // b_t) * (C // c_t)
        step_bytes = 2 * b_t * c_t * HW * itemsize
        # Keep >= 2 grid steps when the problem is big enough to care, so both
        # v7x TensorCores (and the 2-deep pipeline) have work.
        good_split = steps >= 2 or total_bytes <= (2 << 20)
        return (not good_split, -min(step_bytes, 8 << 20), steps)

    b_t, c_t = min(fitting, key=score)
    return b_t, c_t, need(b_t, c_t)


def _make_reorg_kernel(s, H, W, b_t, c_t, chunk):
    Ho, Wo = H // s, W // s
    HW, HoWo = H * W, Ho * Wo
    n_chunks = -(-HW // chunk)

    def kernel(x_ref, o_ref, xt_ref, g_ref):
        # x_ref : (b_t, c_t, H*W)          lanes = H*W   (dense)
        # o_ref : (b_t, s*s, c_t, Ho*Wo)   lanes = Ho*Wo (dense)
        # xt_ref: (H*W, c_t)    spatial-on-sublanes image of the current item
        # g_ref : (Ho*Wo, c_t)  gathered (dy, dx) slab, output-ordered sublanes
        for b in range(b_t):
            # 1) Put the spatial axis on sublanes; chunked along H*W so the
            #    live transpose operand stays within ~16 vregs (no spills).
            for p in range(n_chunks):
                lo = p * chunk
                sz = min(chunk, HW - lo)
                xt_ref[pl.ds(lo, sz), :] = x_ref[b, :, pl.ds(lo, sz)].T
            # 2) For each (dy, dx): Ho sublane-strided loads gather the slab in
            #    exact output order:  source sublane (i*s+dy)*W + (j*s+dx)
            #    -> g_ref sublane i*Wo + j.
            for dy in range(s):
                for dx in range(s):
                    base = dy * W + dx
                    for i in range(Ho):
                        g_ref[pl.ds(i * Wo, Wo), :] = xt_ref[
                            pl.ds(i * s * W + base, Wo, stride=s), :]
                    # 3) One transpose back -> lane-dense (c_t, Ho*Wo) store.
                    o_ref[b, dy * s + dx] = g_ref[...].T

    return kernel


def reorg_layer(x, stride: int = 2):
    """Pallas TPU ReorgLayer.forward: (B, C, H, W) -> (B, s*s*C, H//s, W//s)."""
    B, C, H, W = x.shape
    s = int(stride)
    if s == 1:
        return x
    assert H % s == 0 and W % s == 0, "H and W must be divisible by the stride"
    Ho, Wo = H // s, W // s
    HW, HoWo = H * W, Ho * Wo
    itemsize = jnp.dtype(x.dtype).itemsize

    physical = _physical_vmem_bytes()
    # ~40% of physical VMEM for blocks+scratch: ~51 MiB on v5e/v6e (128 MiB),
    # ~25 MiB on v7x (64 MiB) -- within the review's per-chip recommendations.
    budget = min(max(physical * 2 // 5, 12 << 20), 64 << 20)
    b_t, c_t, vmem_need = _choose_tiles(B, C, HW, HoWo, s, itemsize, budget)

    # Chunk size (lanes) for the spatial-axis transpose; multiple of 128 so
    # loads/stores stay aligned, sized to keep c_t*chunk around 16K elements.
    chunk = max(128, (16384 // max(c_t, 8)) // 128 * 128)

    # Always set an explicit VMEM limit, clamped below physical VMEM.
    vmem_limit = int(min(max(vmem_need + (8 << 20), 32 << 20),
                         physical - (4 << 20)))
    # TODO(synk): extremely large H*W with the minimal block can still exceed
    # physical VMEM; an additional spatial (Ho) tile axis would be needed then.

    kernel = _make_reorg_kernel(s, H, W, b_t, c_t, chunk)

    x3 = x.reshape(B, C, HW)                      # free contiguous view

    out4 = pl.pallas_call(
        kernel,
        out_shape=jax.ShapeDtypeStruct((B, s * s, C, HoWo), x.dtype),
        grid=(B // b_t, C // c_t),
        in_specs=[pl.BlockSpec((b_t, c_t, HW), lambda bi, ci: (bi, ci, 0))],
        out_specs=pl.BlockSpec((b_t, s * s, c_t, HoWo),
                               lambda bi, ci: (bi, 0, ci, 0)),
        scratch_shapes=[pltpu.VMEM((HW, c_t), x.dtype),
                        pltpu.VMEM((HoWo, c_t), x.dtype)],
        compiler_params=pltpu.CompilerParams(
            dimension_semantics=("parallel", "parallel"),
            vmem_limit_bytes=vmem_limit),
        cost_estimate=pl.CostEstimate(
            flops=0, transcendentals=0,
            bytes_accessed=2 * x.size * itemsize),
    )(x3)

    return out4.reshape(B, s * s * C, Ho, Wo)     # free contiguous view


def reorg_reference(x, stride: int = 2):
    """Pure-JAX reference mirroring the PyTorch view/transpose chain."""
    B, C, H, W = x.shape
    s = stride
    Ho, Wo = H // s, W // s
    y = x.reshape(B, C, Ho, s, Wo, s)
    y = jnp.transpose(y, (0, 3, 5, 1, 2, 4))      # (B, dy, dx, C, Ho, Wo)
    return y.reshape(B, s * s * C, Ho, Wo)


if __name__ == "__main__":
    key = jax.random.PRNGKey(0)

    # Small shape implied by the module.
    B, C, H, W = 2, 4, 16, 16
    x = jax.random.normal(key, (B, C, H, W), dtype=jnp.float32)
    out = jax.block_until_ready(reorg_layer(x, stride=2))
    ref = reorg_reference(x, stride=2)
    assert out.shape == (B, 2 * 2 * C, H // 2, W // 2), out.shape
    assert jnp.allclose(out, ref), "Pallas reorg does not match reference"

    # YOLOv2-like odd spatial size (Wo=13) to exercise the masked/unaligned
    # strided-load and sublane-store paths.
    B2, C2, H2, W2 = 2, 16, 26, 26
    x2 = jax.random.normal(jax.random.PRNGKey(1), (B2, C2, H2, W2),
                           dtype=jnp.float32)
    out2 = jax.block_until_ready(reorg_layer(x2, stride=2))
    ref2 = reorg_reference(x2, stride=2)
    assert out2.shape == (B2, 4 * C2, H2 // 2, W2 // 2), out2.shape
    assert jnp.allclose(out2, ref2), "Pallas reorg (26x26) mismatch"

    print("KERNEL_OK")
</pallas_src>

<mosaic_0001>
module attributes {stable_mosaic.version = 11 : i64} {
  func.func @kernel(%arg0: i32, %arg1: i32, %arg2: memref<2x4x256xf32, #tpu.memory_space<vmem>>, %arg3: memref<2x4x4x64xf32, #tpu.memory_space<vmem>>, %arg4: memref<256x4xf32, #tpu.memory_space<vmem>>, %arg5: memref<64x4xf32, #tpu.memory_space<vmem>>) attributes {dimension_semantics = [#tpu.dimension_semantics<parallel>, #tpu.dimension_semantics<parallel>], iteration_bounds = array<i64: 1, 1>, scalar_prefetch = 0 : i64, scratch_operands = 2 : i64, tpu.core_type = #tpu.core_type<tc>, window_params = [{transform_indices = @transform_0, window_bounds = array<i64: 2, 4, 256>}, {transform_indices = @transform_1, window_bounds = array<i64: 2, 4, 4, 64>}]} {
    %c0 = arith.constant 0 : index
    %c0_0 = arith.constant 0 : index
    %c0_1 = arith.constant 0 : index
    %0 = vector.load %arg2[%c0, %c0_0, %c0_1] : memref<2x4x256xf32, #tpu.memory_space<vmem>>, vector<1x4x256xf32>
    %1 = vector.shape_cast %0 : vector<1x4x256xf32> to vector<4x256xf32>
    %2 = tpu.transpose %1, [1, 0] : vector<4x256xf32> -> vector<256x4xf32>
    %c0_2 = arith.constant 0 : index
    %c0_3 = arith.constant 0 : index
    %3 = vector.load %arg4[%c0_2, %c0_3] : memref<256x4xf32, #tpu.memory_space<vmem>>, vector<256x4xf32>
    tpu.vector_store %arg4[%c0_2, %c0_3], %2 {strides = array<i32>} : memref<256x4xf32, #tpu.memory_space<vmem>>, vector<256x4xf32>,
    %c0_4 = arith.constant 0 : index
    %c0_5 = arith.constant 0 : index
    %4 = tpu.strided_load %arg4[%c0_4, %c0_5] {strides = array<i32: 2, 1>} : memref<256x4xf32, #tpu.memory_space<vmem>>, vector<8x4xf32>
    %c0_6 = arith.constant 0 : index
    %c0_7 = arith.constant 0 : index
    %5 = vector.load %arg5[%c0_6, %c0_7] : memref<64x4xf32, #tpu.memory_space<vmem>>, vector<8x4xf32>
    tpu.vector_store %arg5[%c0_6, %c0_7], %4 {strides = array<i32>} : memref<64x4xf32, #tpu.memory_space<vmem>>, vector<8x4xf32>,
    %c32 = arith.constant 32 : index
    %c0_8 = arith.constant 0 : index
    %6 = tpu.strided_load %arg4[%c32, %c0_8] {strides = array<i32: 2, 1>} : memref<256x4xf32, #tpu.memory_space<vmem>>, vector<8x4xf32>
    %c8 = arith.constant 8 : index
    %c0_9 = arith.constant 0 : index
    %7 = vector.load %arg5[%c8, %c0_9] : memref<64x4xf32, #tpu.memory_space<vmem>>, vector<8x4xf32>
    tpu.vector_store %arg5[%c8, %c0_9], %6 {strides = array<i32>} : memref<64x4xf32, #tpu.memory_space<vmem>>, vector<8x4xf32>,
    %c64 = arith.constant 64 : index
    %c0_10 = arith.constant 0 : index
    %8 = tpu.strided_load %arg4[%c64, %c0_10] {strides = array<i32: 2, 1>} : memref<256x4xf32, #tpu.memory_space<vmem>>, vector<8x4xf32>
    %c16 = arith.constant 16 : index
    %c0_11 = arith.constant 0 : index
    %9 = vector.load %arg5[%c16, %c0_11] : memref<64x4xf32, #tpu.memory_space<vmem>>, vector<8x4xf32>
    tpu.vector_store %arg5[%c16, %c0_11], %8 {strides = array<i32>} : memref<64x4xf32, #tpu.memory_space<vmem>>, vector<8x4xf32>,
    %c96 = arith.constant 96 : index
    %c0_12 = arith.constant 0 : index
    %10 = tpu.strided_load %arg4[%c96, %c0_12] {strides = array<i32: 2, 1>} : memref<256x4xf32, #tpu.memory_space<vmem>>, vector<8x4xf32>
    %c24 = arith.constant 24 : index
    %c0_13 = arith.constant 0 : index
    %11 = vector.load %arg5[%c24, %c0_13] : memref<64x4xf32, #tpu.memory_space<vmem>>, vector<8x4xf32>
    tpu.vector_store %arg5[%c24, %c0_13], %10 {strides = array<i32>} : memref<64x4xf32, #tpu.memory_space<vmem>>, vector<8x4xf32>,
    %c128 = arith.constant 128 : index
    %c0_14 = arith.constant 0 : index
    %12 = tpu.strided_load %arg4[%c128, %c0_14] {strides = array<i32: 2, 1>} : memref<256x4xf32, #tpu.memory_space<vmem>>, vector<8x4xf32>
    %c32_15 = arith.constant 32 : index
    %c0_16 = arith.constant 0 : index
    %13 = vector.load %arg5[%c32_15, %c0_16] : memref<64x4xf32, #tpu.memory_space<vmem>>, vector<8x4xf32>
    tpu.vector_store %arg5[%c32_15, %c0_16], %12 {strides = array<i32>} : memref<64x4xf32, #tpu.memory_space<vmem>>, vector<8x4xf32>,
    %c160 = arith.constant 160 : index
    %c0_17 = arith.constant 0 : index
    %14 = tpu.strided_load %arg4[%c160, %c0_17] {strides = array<i32: 2, 1>} : memref<256x4xf32, #tpu.memory_space<vmem>>, vector<8x4xf32>
    %c40 = arith.constant 40 : index
    %c0_18 = arith.constant 0 : index
    %15 = vector.load %arg5[%c40, %c0_18] : memref<64x4xf32, #tpu.memory_space<vmem>>, vector<8x4xf32>
    tpu.vector_store %arg5[%c40, %c0_18], %14 {strides = array<i32>} : memref<64x4xf32, #tpu.memory_space<vmem>>, vector<8x4xf32>,
    %c192 = arith.constant 192 : index
    %c0_19 = arith.constant 0 : index
    %16 = tpu.strided_load %arg4[%c192, %c0_19] {strides = array<i32: 2, 1>} : memref<256x4xf32, #tpu.memory_space<vmem>>, vector<8x4xf32>
    %c48 = arith.constant 48 : index
    %c0_20 = arith.constant 0 : index
    %17 = vector.load %arg5[%c48, %c0_20] : memref<64x4xf32, #tpu.memory_space<vmem>>, vector<8x4xf32>
    tpu.vector_store %arg5[%c48, %c0_20], %16 {strides = array<i32>} : memref<64x4xf32, #tpu.memory_space<vmem>>, vector<8x4xf32>,
    %c224 = arith.constant 224 : index
    %c0_21 = arith.constant 0 : index
    %18 = tpu.strided_load %arg4[%c224, %c0_21] {strides = array<i32: 2, 1>} : memref<256x4xf32, #tpu.memory_space<vmem>>, vector<8x4xf32>
    %c56 = arith.constant 56 : index
    %c0_22 = arith.constant 0 : index
    %19 = vector.load %arg5[%c56, %c0_22] : memref<64x4xf32, #tpu.memory_space<vmem>>, vector<8x4xf32>
    tpu.vector_store %arg5[%c56, %c0_22], %18 {strides = array<i32>} : memref<64x4xf32, #tpu.memory_space<vmem>>, vector<8x4xf32>,
    %c0_23 = arith.constant 0 : index
    %c0_24 = arith.constant 0 : index
    %20 = vector.load %arg5[%c0_23, %c0_24] : memref<64x4xf32, #tpu.memory_space<vmem>>, vector<64x4xf32>
    %21 = tpu.transpose %20, [1, 0] : vector<64x4xf32> -> vector<4x64xf32>
    %c0_25 = arith.constant 0 : index
    %c0_26 = arith.constant 0 : index
    %c0_27 = arith.constant 0 : index
    %c0_28 = arith.constant 0 : index
    %22 = vector.load %arg3[%c0_25, %c0_26, %c0_27, %c0_28] : memref<2x4x4x64xf32, #tpu.memory_space<vmem>>, vector<1x1x4x64xf32>
    %23 = vector.shape_cast %22 : vector<1x1x4x64xf32> to vector<4x64xf32>
    %24 = vector.shape_cast %21 : vector<4x64xf32> to vector<1x1x4x64xf32>
    tpu.vector_store %arg3[%c0_25, %c0_26, %c0_27, %c0_28], %24 {strides = array<i32>} : memref<2x4x4x64xf32, #tpu.memory_space<vmem>>, vector<1x1x4x64xf32>,
    %c1 = arith.constant 1 : index
    %c0_29 = arith.constant 0 : index
    %25 = tpu.strided_load %arg4[%c1, %c0_29] {strides = array<i32: 2, 1>} : memref<256x4xf32, #tpu.memory_space<vmem>>, vector<8x4xf32>
    %c0_30 = arith.constant 0 : index
    %c0_31 = arith.constant 0 : index
    %26 = vector.load %arg5[%c0_30, %c0_31] : memref<64x4xf32, #tpu.memory_space<vmem>>, vector<8x4xf32>
    tpu.vector_store %arg5[%c0_30, %c0_31], %25 {strides = array<i32>} : memref<64x4xf32, #tpu.memory_space<vmem>>, vector<8x4xf32>,
    %c33 = arith.constant 33 : index
    %c0_32 = arith.constant 0 : index
    %27 = tpu.strided_load %arg4[%c33, %c0_32] {strides = array<i32: 2, 1>} : memref<256x4xf32, #tpu.memory_space<vmem>>, vector<8x4xf32>
    %c8_33 = arith.constant 8 : index
    %c0_34 = arith.constant 0 : index
    %28 = vector.load %arg5[%c8_33, %c0_34] : memref<64x4xf32, #tpu.memory_space<vmem>>, vector<8x4xf32>
    tpu.vector_store %arg5[%c8_33, %c0_34], %27 {strides = array<i32>} : memref<64x4xf32, #tpu.memory_space<vmem>>, vector<8x4xf32>,
    %c65 = arith.constant 65 : index
    %c0_35 = arith.constant 0 : index
    %29 = tpu.strided_load %arg4[%c65, %c0_35] {strides = array<i32: 2, 1>} : memref<256x4xf32, #tpu.memory_space<vmem>>, vector<8x4xf32>
    %c16_36 = arith.constant 16 : index
    %c0_37 = arith.constant 0 : index
    %30 = vector.load %arg5[%c16_36, %c0_37] : memref<64x4xf32, #tpu.memory_space<vmem>>, vector<8x4xf32>
    tpu.vector_store %arg5[%c16_36, %c0_37], %29 {strides = array<i32>} : memref<64x4xf32, #tpu.memory_space<vmem>>, vector<8x4xf32>,
    %c97 = arith.constant 97 : index
    %c0_38 = arith.constant 0 : index
    %31 = tpu.strided_load %arg4[%c97, %c0_38] {strides = array<i32: 2, 1>} : memref<256x4xf32, #tpu.memory_space<vmem>>, vector<8x4xf32>
    %c24_39 = arith.constant 24 : index
    %c0_40 = arith.constant 0 : index
    %32 = vector.load %arg5[%c24_39, %c0_40] : memref<64x4xf32, #tpu.memory_space<vmem>>, vector<8x4xf32>
    tpu.vector_store %arg5[%c24_39, %c0_40], %31 {strides = array<i32>} : memref<64x4xf32, #tpu.memory_space<vmem>>, vector<8x4xf32>,
    %c129 = arith.constant 129 : index
    %c0_41 = arith.constant 0 : index
    %33 = tpu.strided_load %arg4[%c129, %c0_41] {strides = array<i32: 2, 1>} : memref<256x4xf32, #tpu.memory_space<vmem>>, vector<8x4xf32>
    %c32_42 = arith.constant 32 : index
    %c0_43 = arith.constant 0 : index
    %34 = vector.load %arg5[%c32_42, %c0_43] : memref<64x4xf32, #tpu.memory_space<vmem>>, vector<8x4xf32>
    tpu.vector_store %arg5[%c32_42, %c0_43], %33 {strides = array<i32>} : memref<64x4xf32, #tpu.memory_space<vmem>>, vector<8x4xf32>,
    %c161 = arith.constant 161 : index
    %c0_44 = arith.constant 0 : index
    %35 = tpu.strided_load %arg4[%c161, %c0_44] {strides = array<i32: 2, 1>} : memref<256x4xf32, #tpu.memory_space<vmem>>, vector<8x4xf32>
    %c40_45 = arith.constant 40 : index
    %c0_46 = arith.constant 0 : index
    %36 = vector.load %arg5[%c40_45, %c0_46] : memref<64x4xf32, #tpu.memory_space<vmem>>, vector<8x4xf32>
    tpu.vector_store %arg5[%c40_45, %c0_46], %35 {strides = array<i32>} : memref<64x4xf32, #tpu.memory_space<vmem>>, vector<8x4xf32>,
    %c193 = arith.constant 193 : index
    %c0_47 = arith.constant 0 : index
    %37 = tpu.strided_load %arg4[%c193, %c0_47] {strides = array<i32: 2, 1>} : memref<256x4xf32, #tpu.memory_space<vmem>>, vector<8x4xf32>
    %c48_48 = arith.constant 48 : index
    %c0_49 = arith.constant 0 : index
    %38 = vector.load %arg5[%c48_48, %c0_49] : memref<64x4xf32, #tpu.memory_space<vmem>>, vector<8x4xf32>
    tpu.vector_store %arg5[%c48_48, %c0_49], %37 {strides = array<i32>} : memref<64x4xf32, #tpu.memory_space<vmem>>, vector<8x4xf32>,
    %c225 = arith.constant 225 : index
    %c0_50 = arith.constant 0 : index
    %39 = tpu.strided_load %arg4[%c225, %c0_50] {strides = array<i32: 2, 1>} : memref<256x4xf32, #tpu.memory_space<vmem>>, vector<8x4xf32>
    %c56_51 = arith.constant 56 : index
    %c0_52 = arith.constant 0 : index
    %40 = vector.load %arg5[%c56_51, %c0_52] : memref<64x4xf32, #tpu.memory_space<vmem>>, vector<8x4xf32>
    tpu.vector_store %arg5[%c56_51, %c0_52], %39 {strides = array<i32>} : memref<64x4xf32, #tpu.memory_space<vmem>>, vector<8x4xf32>,
    %c0_53 = arith.constant 0 : index
    %c0_54 = arith.constant 0 : index
    %41 = vector.load %arg5[%c0_53, %c0_54] : memref<64x4xf32, #tpu.memory_space<vmem>>, vector<64x4xf32>
    %42 = tpu.transpose %41, [1, 0] : vector<64x4xf32> -> vector<4x64xf32>
    %c0_55 = arith.constant 0 : index
    %c1_56 = arith.constant 1 : index
    %c0_57 = arith.constant 0 : index
    %c0_58 = arith.constant 0 : index
    %43 = vector.load %arg3[%c0_55, %c1_56, %c0_57, %c0_58] : memref<2x4x4x64xf32, #tpu.memory_space<vmem>>, vector<1x1x4x64xf32>
    %44 = vector.shape_cast %43 : vector<1x1x4x64xf32> to vector<4x64xf32>
    %45 = vector.shape_cast %42 : vector<4x64xf32> to vector<1x1x4x64xf32>
    tpu.vector_store %arg3[%c0_55, %c1_56, %c0_57, %c0_58], %45 {strides = array<i32>} : memref<2x4x4x64xf32, #tpu.memory_space<vmem>>, vector<1x1x4x64xf32>,
    %c16_59 = arith.constant 16 : index
    %c0_60 = arith.constant 0 : index
    %46 = tpu.strided_load %arg4[%c16_59, %c0_60] {strides = array<i32: 2, 1>} : memref<256x4xf32, #tpu.memory_space<vmem>>, vector<8x4xf32>
    %c0_61 = arith.constant 0 : index
    %c0_62 = arith.constant 0 : index
    %47 = vector.load %arg5[%c0_61, %c0_62] : memref<64x4xf32, #tpu.memory_space<vmem>>, vector<8x4xf32>
    tpu.vector_store %arg5[%c0_61, %c0_62], %46 {strides = array<i32>} : memref<64x4xf32, #tpu.memory_space<vmem>>, vector<8x4xf32>,
    %c48_63 = arith.constant 48 : index
    %c0_64 = arith.constant 0 : index
    %48 = tpu.strided_load %arg4[%c48_63, %c0_64] {strides = array<i32: 2, 1>} : memref<256x4xf32, #tpu.memory_space<vmem>>, vector<8x4xf32>
    %c8_65 = arith.constant 8 : index
    %c0_66 = arith.constant 0 : index
    %49 = vector.load %arg5[%c8_65, %c0_66] : memref<64x4xf32, #tpu.memory_space<vmem>>, vector<8x4xf32>
    tpu.vector_store %arg5[%c8_65, %c0_66], %48 {strides = array<i32>} : memref<64x4xf32, #tpu.memory_space<vmem>>, vector<8x4xf32>,
    %c80 = arith.constant 80 : index
    %c0_67 = arith.constant 0 : index
    %50 = tpu.strided_load %arg4[%c80, %c0_67] {strides = array<i32: 2, 1>} : memref<256x4xf32, #tpu.memory_space<vmem>>, vector<8x4xf32>
    %c16_68 = arith.constant 16 : index
    %c0_69 = arith.constant 0 : index
    %51 = vector.load %arg5[%c16_68, %c0_69] : memref<64x4xf32, #tpu.memory_space<vmem>>, vector<8x4xf32>
    tpu.vector_store %arg5[%c16_68, %c0_69], %50 {strides = array<i32>} : memref<64x4xf32, #tpu.memory_space<vmem>>, vector<8x4xf32>,
    %c112 = arith.constant 112 : index
    %c0_70 = arith.constant 0 : index
    %52 = tpu.strided_load %arg4[%c112, %c0_70] {strides = array<i32: 2, 1>} : memref<256x4xf32, #tpu.memory_space<vmem>>, vector<8x4xf32>
    %c24_71 = arith.constant 24 : index
    %c0_72 = arith.constant 0 : index
    %53 = vector.load %arg5[%c24_71, %c0_72] : memref<64x4xf32, #tpu.memory_space<vmem>>, vector<8x4xf32>
    tpu.vector_store %arg5[%c24_71, %c0_72], %52 {strides = array<i32>} : memref<64x4xf32, #tpu.memory_space<vmem>>, vector<8x4xf32>,
    %c144 = arith.constant 144 : index
    %c0_73 = arith.constant 0 : index
    %54 = tpu.strided_load %arg4[%c144, %c0_73] {strides = array<i32: 2, 1>} : memref<256x4xf32, #tpu.memory_space<vmem>>, vector<8x4xf32>
    %c32_74 = arith.constant 32 : index
    %c0_75 = arith.constant 0 : index
    %55 = vector.load %arg5[%c32_74, %c0_75] : memref<64x4xf32, #tpu.memory_space<vmem>>, vector<8x4xf32>
    tpu.vector_store %arg5[%c32_74, %c0_75], %54 {strides = array<i32>} : memref<64x4xf32, #tpu.memory_space<vmem>>, vector<8x4xf32>,
    %c176 = arith.constant 176 : index
    %c0_76 = arith.constant 0 : index
    %56 = tpu.strided_load %arg4[%c176, %c0_76] {strides = array<i32: 2, 1>} : memref<256x4xf32, #tpu.memory_space<vmem>>, vector<8x4xf32>
    %c40_77 = arith.constant 40 : index
    %c0_78 = arith.constant 0 : index
    %57 = vector.load %arg5[%c40_77, %c0_78] : memref<64x4xf32, #tpu.memory_space<vmem>>, vector<8x4xf32>
    tpu.vector_store %arg5[%c40_77, %c0_78], %56 {strides = array<i32>} : memref<64x4xf32, #tpu.memory_space<vmem>>, vector<8x4xf32>,
    %c208 = arith.constant 208 : index
    %c0_79 = arith.constant 0 : index
    %58 = tpu.strided_load %arg4[%c208, %c0_79] {strides = array<i32: 2, 1>} : memref<256x4xf32, #tpu.memory_space<vmem>>, vector<8x4xf32>
    %c48_80 = arith.constant 48 : index
    %c0_81 = arith.constant 0 : index
    %59 = vector.load %arg5[%c48_80, %c0_81] : memref<64x4xf32, #tpu.memory_space<vmem>>, vector<8x4xf32>
    tpu.vector_store %arg5[%c48_80, %c0_81], %58 {strides = array<i32>} : memref<64x4xf32, #tpu.memory_space<vmem>>, vector<8x4xf32>,
    %c240 = arith.constant 240 : index
    %c0_82 = arith.constant 0 : index
    %60 = tpu.strided_load %arg4[%c240, %c0_82] {strides = array<i32: 2, 1>} : memref<256x4xf32, #tpu.memory_space<vmem>>, vector<8x4xf32>
    %c56_83 = arith.constant 56 : index
    %c0_84 = arith.constant 0 : index
    %61 = vector.load %arg5[%c56_83, %c0_84] : memref<64x4xf32, #tpu.memory_space<vmem>>, vector<8x4xf32>
    tpu.vector_store %arg5[%c56_83, %c0_84], %60 {strides = array<i32>} : memref<64x4xf32, #tpu.memory_space<vmem>>, vector<8x4xf32>,
    %c0_85 = arith.constant 0 : index
    %c0_86 = arith.constant 0 : index
    %62 = vector.load %arg5[%c0_85, %c0_86] : memref<64x4xf32, #tpu.memory_space<vmem>>, vector<64x4xf32>
    %63 = tpu.transpose %62, [1, 0] : vector<64x4xf32> -> vector<4x64xf32>
    %c0_87 = arith.constant 0 : index
    %c2 = arith.constant 2 : index
    %c0_88 = arith.constant 0 : index
    %c0_89 = arith.constant 0 : index
    %64 = vector.load %arg3[%c0_87, %c2, %c0_88, %c0_89] : memref<2x4x4x64xf32, #tpu.memory_space<vmem>>, vector<1x1x4x64xf32>
    %65 = vector.shape_cast %64 : vector<1x1x4x64xf32> to vector<4x64xf32>
    %66 = vector.shape_cast %63 : vector<4x64xf32> to vector<1x1x4x64xf32>
    tpu.vector_store %arg3[%c0_87, %c2, %c0_88, %c0_89], %66 {strides = array<i32>} : memref<2x4x4x64xf32, #tpu.memory_space<vmem>>, vector<1x1x4x64xf32>,
    %c17 = arith.constant 17 : index
    %c0_90 = arith.constant 0 : index
    %67 = tpu.strided_load %arg4[%c17, %c0_90] {strides = array<i32: 2, 1>} : memref<256x4xf32, #tpu.memory_space<vmem>>, vector<8x4xf32>
    %c0_91 = arith.constant 0 : index
    %c0_92 = arith.constant 0 : index
    %68 = vector.load %arg5[%c0_91, %c0_92] : memref<64x4xf32, #tpu.memory_space<vmem>>, vector<8x4xf32>
    tpu.vector_store %arg5[%c0_91, %c0_92], %67 {strides = array<i32>} : memref<64x4xf32, #tpu.memory_space<vmem>>, vector<8x4xf32>,
    %c49 = arith.constant 49 : index
    %c0_93 = arith.constant 0 : index
    %69 = tpu.strided_load %arg4[%c49, %c0_93] {strides = array<i32: 2, 1>} : memref<256x4xf32, #tpu.memory_space<vmem>>, vector<8x4xf32>
    %c8_94 = arith.constant 8 : index
    %c0_95 = arith.constant 0 : index
    %70 = vector.load %arg5[%c8_94, %c0_95] : memref<64x4xf32, #tpu.memory_space<vmem>>, vector<8x4xf32>
    tpu.vector_store %arg5[%c8_94, %c0_95], %69 {strides = array<i32>} : memref<64x4xf32, #tpu.memory_space<vmem>>, vector<8x4xf32>,
    %c81 = arith.constant 81 : index
    %c0_96 = arith.constant 0 : index
    %71 = tpu.strided_load %arg4[%c81, %c0_96] {strides = array<i32: 2, 1>} : memref<256x4xf32, #tpu.memory_space<vmem>>, vector<8x4xf32>
    %c16_97 = arith.constant 16 : index
    %c0_98 = arith.constant 0 : index
    %72 = vector.load %arg5[%c16_97, %c0_98] : memref<64x4xf32, #tpu.memory_space<vmem>>, vector<8x4xf32>
    tpu.vector_store %arg5[%c16_97, %c0_98], %71 {strides = array<i32>} : memref<64x4xf32, #tpu.memory_space<vmem>>, vector<8x4xf32>,
    %c113 = arith.constant 113 : index
    %c0_99 = arith.constant 0 : index
    %73 = tpu.strided_load %arg4[%c113, %c0_99] {strides = array<i32: 2, 1>} : memref<256x4xf32, #tpu.memory_space<vmem>>, vector<8x4xf32>
    %c24_100 = arith.constant 24 : index
    %c0_101 = arith.constant 0 : index
    %74 = vector.load %arg5[%c24_100, %c0_101] : memref<64x4xf32, #tpu.memory_space<vmem>>, vector<8x4xf32>
    tpu.vector_store %arg5[%c24_100, %c0_101], %73 {strides = array<i32>} : memref<64x4xf32, #tpu.memory_space<vmem>>, vector<8x4xf32>,
    %c145 = arith.constant 145 : index
    %c0_102 = arith.constant 0 : index
    %75 = tpu.strided_load %arg4[%c145, %c0_102] {strides = array<i32: 2, 1>} : memref<256x4xf32, #tpu.memory_space<vmem>>, vector<8x4xf32>
    %c32_103 = arith.constant 32 : index
    %c0_104 = arith.constant 0 : index
    %76 = vector.load %arg5[%c32_103, %c0_104] : memref<64x4xf32, #tpu.memory_space<vmem>>, vector<8x4xf32>
    tpu.vector_store %arg5[%c32_103, %c0_104], %75 {strides = array<i32>} : memref<64x4xf32, #tpu.memory_space<vmem>>, vector<8x4xf32>,
    %c177 = arith.constant 177 : index
    %c0_105 = arith.constant 0 : index
    %77 = tpu.strided_load %arg4[%c177, %c0_105] {strides = array<i32: 2, 1>} : memref<256x4xf32, #tpu.memory_space<vmem>>, vector<8x4xf32>
    %c40_106 = arith.constant 40 : index
    %c0_107 = arith.constant 0 : index
    %78 = vector.load %arg5[%c40_106, %c0_107] : memref<64x4xf32, #tpu.memory_space<vmem>>, vector<8x4xf32>
    tpu.vector_store %arg5[%c40_106, %c0_107], %77 {strides = array<i32>} : memref<64x4xf32, #tpu.memory_space<vmem>>, vector<8x4xf32>,
    %c209 = arith.constant 209 : index
    %c0_108 = arith.constant 0 : index
    %79 = tpu.strided_load %arg4[%c209, %c0_108] {strides = array<i32: 2, 1>} : memref<256x4xf32, #tpu.memory_space<vmem>>, vector<8x4xf32>
    %c48_109 = arith.constant 48 : index
    %c0_110 = arith.constant 0 : index
    %80 = vector.load %arg5[%c48_109, %c0_110] : memref<64x4xf32, #tpu.memory_space<vmem>>, vector<8x4xf32>
    tpu.vector_store %arg5[%c48_109, %c0_110], %79 {strides = array<i32>} : memref<64x4xf32, #tpu.memory_space<vmem>>, vector<8x4xf32>,
    %c241 = arith.constant 241 : index
    %c0_111 = arith.constant 0 : index
    %81 = tpu.strided_load %arg4[%c241, %c0_111] {strides = array<i32: 2, 1>} : memref<256x4xf32, #tpu.memory_space<vmem>>, vector<8x4xf32>
    %c56_112 = arith.constant 56 : index
    %c0_113 = arith.constant 0 : index
    %82 = vector.load %arg5[%c56_112, %c0_113] : memref<64x4xf32, #tpu.memory_space<vmem>>, vector<8x4xf32>
    tpu.vector_store %arg5[%c56_112, %c0_113], %81 {strides = array<i32>} : memref<64x4xf32, #tpu.memory_space<vmem>>, vector<8x4xf32>,
    %c0_114 = arith.constant 0 : index
    %c0_115 = arith.constant 0 : index
    %83 = vector.load %arg5[%c0_114, %c0_115] : memref<64x4xf32, #tpu.memory_space<vmem>>, vector<64x4xf32>
    %84 = tpu.transpose %83, [1, 0] : vector<64x4xf32> -> vector<4x64xf32>
    %c0_116 = arith.constant 0 : index
    %c3 = arith.constant 3 : index
    %c0_117 = arith.constant 0 : index
    %c0_118 = arith.constant 0 : index
    %85 = vector.load %arg3[%c0_116, %c3, %c0_117, %c0_118] : memref<2x4x4x64xf32, #tpu.memory_space<vmem>>, vector<1x1x4x64xf32>
    %86 = vector.shape_cast %85 : vector<1x1x4x64xf32> to vector<4x64xf32>
    %87 = vector.shape_cast %84 : vector<4x64xf32> to vector<1x1x4x64xf32>
    tpu.vector_store %arg3[%c0_116, %c3, %c0_117, %c0_118], %87 {strides = array<i32>} : memref<2x4x4x64xf32, #tpu.memory_space<vmem>>, vector<1x1x4x64xf32>,
    %c1_119 = arith.constant 1 : index
    %c0_120 = arith.constant 0 : index
    %c0_121 = arith.constant 0 : index
    %88 = vector.load %arg2[%c1_119, %c0_120, %c0_121] : memref<2x4x256xf32, #tpu.memory_space<vmem>>, vector<1x4x256xf32>
    %89 = vector.shape_cast %88 : vector<1x4x256xf32> to vector<4x256xf32>
    %90 = tpu.transpose %89, [1, 0] : vector<4x256xf32> -> vector<256x4xf32>
    %c0_122 = arith.constant 0 : index
    %c0_123 = arith.constant 0 : index
    %91 = vector.load %arg4[%c0_122, %c0_123] : memref<256x4xf32, #tpu.memory_space<vmem>>, vector<256x4xf32>
    tpu.vector_store %arg4[%c0_122, %c0_123], %90 {strides = array<i32>} : memref<256x4xf32, #tpu.memory_space<vmem>>, vector<256x4xf32>,
    %c0_124 = arith.constant 0 : index
    %c0_125 = arith.constant 0 : index
    %92 = tpu.strided_load %arg4[%c0_124, %c0_125] {strides = array<i32: 2, 1>} : memref<256x4xf32, #tpu.memory_space<vmem>>, vector<8x4xf32>
    %c0_126 = arith.constant 0 : index
    %c0_127 = arith.constant 0 : index
    %93 = vector.load %arg5[%c0_126, %c0_127] : memref<64x4xf32, #tpu.memory_space<vmem>>, vector<8x4xf32>
    tpu.vector_store %arg5[%c0_126, %c0_127], %92 {strides = array<i32>} : memref<64x4xf32, #tpu.memory_space<vmem>>, vector<8x4xf32>,
    %c32_128 = arith.constant 32 : index
    %c0_129 = arith.constant 0 : index
    %94 = tpu.strided_load %arg4[%c32_128, %c0_129] {strides = array<i32: 2, 1>} : memref<256x4xf32, #tpu.memory_space<vmem>>, vector<8x4xf32>
    %c8_130 = arith.constant 8 : index
    %c0_131 = arith.constant 0 : index
    %95 = vector.load %arg5[%c8_130, %c0_131] : memref<64x4xf32, #tpu.memory_space<vmem>>, vector<8x4xf32>
    tpu.vector_store %arg5[%c8_130, %c0_131], %94 {strides = array<i32>} : memref<64x4xf32, #tpu.memory_space<vmem>>, vector<8x4xf32>,
    %c64_132 = arith.constant 64 : index
    %c0_133 = arith.constant 0 : index
    %96 = tpu.strided_load %arg4[%c64_132, %c0_133] {strides = array<i32: 2, 1>} : memref<256x4xf32, #tpu.memory_space<vmem>>, vector<8x4xf32>
    %c16_134 = arith.constant 16 : index
    %c0_135 = arith.constant 0 : index
    %97 = vector.load %arg5[%c16_134, %c0_135] : memref<64x4xf32, #tpu.memory_space<vmem>>, vector<8x4xf32>
    tpu.vector_store %arg5[%c16_134, %c0_135], %96 {strides = array<i32>} : memref<64x4xf32, #tpu.memory_space<vmem>>, vector<8x4xf32>,
    %c96_136 = arith.constant 96 : index
    %c0_137 = arith.constant 0 : index
    %98 = tpu.strided_load %arg4[%c96_136, %c0_137] {strides = array<i32: 2, 1>} : memref<256x4xf32, #tpu.memory_space<vmem>>, vector<8x4xf32>
    %c24_138 = arith.constant 24 : index
    %c0_139 = arith.constant 0 : index
    %99 = vector.load %arg5[%c24_138, %c0_139] : memref<64x4xf32, #tpu.memory_space<vmem>>, vector<8x4xf32>
    tpu.vector_store %arg5[%c24_138, %c0_139], %98 {strides = array<i32>} : memref<64x4xf32, #tpu.memory_space<vmem>>, vector<8x4xf32>,
    %c128_140 = arith.constant 128 : index
    %c0_141 = arith.constant 0 : index
    %100 = tpu.strided_load %arg4[%c128_140, %c0_141] {strides = array<i32: 2, 1>} : memref<256x4xf32, #tpu.memory_space<vmem>>, vector<8x4xf32>
    %c32_142 = arith.constant 32 : index
    %c0_143 = arith.constant 0 : index
    %101 = vector.load %arg5[%c32_142, %c0_143] : memref<64x4xf32, #tpu.memory_space<vmem>>, vector<8x4xf32>
    tpu.vector_store %arg5[%c32_142, %c0_143], %100 {strides = array<i32>} : memref<64x4xf32, #tpu.memory_space<vmem>>, vector<8x4xf32>,
    %c160_144 = arith.constant 160 : index
    %c0_145 = arith.constant 0 : index
    %102 = tpu.strided_load %arg4[%c160_144, %c0_145] {strides = array<i32: 2, 1>} : memref<256x4xf32, #tpu.memory_space<vmem>>, vector<8x4xf32>
    %c40_146 = arith.constant 40 : index
    %c0_147 = arith.constant 0 : index
    %103 = vector.load %arg5[%c40_146, %c0_147] : memref<64x4xf32, #tpu.memory_space<vmem>>, vector<8x4xf32>
    tpu.vector_store %arg5[%c40_146, %c0_147], %102 {strides = array<i32>} : memref<64x4xf32, #tpu.memory_space<vmem>>, vector<8x4xf32>,
    %c192_148 = arith.constant 192 : index
    %c0_149 = arith.constant 0 : index
    %104 = tpu.strided_load %arg4[%c192_148, %c0_149] {strides = array<i32: 2, 1>} : memref<256x4xf32, #tpu.memory_space<vmem>>, vector<8x4xf32>
    %c48_150 = arith.constant 48 : index
    %c0_151 = arith.constant 0 : index
    %105 = vector.load %arg5[%c48_150, %c0_151] : memref<64x4xf32, #tpu.memory_space<vmem>>, vector<8x4xf32>
    tpu.vector_store %arg5[%c48_150, %c0_151], %104 {strides = array<i32>} : memref<64x4xf32, #tpu.memory_space<vmem>>, vector<8x4xf32>,
    %c224_152 = arith.constant 224 : index
    %c0_153 = arith.constant 0 : index
    %106 = tpu.strided_load %arg4[%c224_152, %c0_153] {strides = array<i32: 2, 1>} : memref<256x4xf32, #tpu.memory_space<vmem>>, vector<8x4xf32>
    %c56_154 = arith.constant 56 : index
    %c0_155 = arith.constant 0 : index
    %107 = vector.load %arg5[%c56_154, %c0_155] : memref<64x4xf32, #tpu.memory_space<vmem>>, vector<8x4xf32>
    tpu.vector_store %arg5[%c56_154, %c0_155], %106 {strides = array<i32>} : memref<64x4xf32, #tpu.memory_space<vmem>>, vector<8x4xf32>,
    %c0_156 = arith.constant 0 : index
    %c0_157 = arith.constant 0 : index
    %108 = vector.load %arg5[%c0_156, %c0_157] : memref<64x4xf32, #tpu.memory_space<vmem>>, vector<64x4xf32>
    %109 = tpu.transpose %108, [1, 0] : vector<64x4xf32> -> vector<4x64xf32>
    %c1_158 = arith.constant 1 : index
    %c0_159 = arith.constant 0 : index
    %c0_160 = arith.constant 0 : index
    %c0_161 = arith.constant 0 : index
    %110 = vector.load %arg3[%c1_158, %c0_159, %c0_160, %c0_161] : memref<2x4x4x64xf32, #tpu.memory_space<vmem>>, vector<1x1x4x64xf32>
    %111 = vector.shape_cast %110 : vector<1x1x4x64xf32> to vector<4x64xf32>
    %112 = vector.shape_cast %109 : vector<4x64xf32> to vector<1x1x4x64xf32>
    tpu.vector_store %arg3[%c1_158, %c0_159, %c0_160, %c0_161], %112 {strides = array<i32>} : memref<2x4x4x64xf32, #tpu.memory_space<vmem>>, vector<1x1x4x64xf32>,
    %c1_162 = arith.constant 1 : index
    %c0_163 = arith.constant 0 : index
    %113 = tpu.strided_load %arg4[%c1_162, %c0_163] {strides = array<i32: 2, 1>} : memref<256x4xf32, #tpu.memory_space<vmem>>, vector<8x4xf32>
    %c0_164 = arith.constant 0 : index
    %c0_165 = arith.constant 0 : index
    %114 = vector.load %arg5[%c0_164, %c0_165] : memref<64x4xf32, #tpu.memory_space<vmem>>, vector<8x4xf32>
    tpu.vector_store %arg5[%c0_164, %c0_165], %113 {strides = array<i32>} : memref<64x4xf32, #tpu.memory_space<vmem>>, vector<8x4xf32>,
    %c33_166 = arith.constant 33 : index
    %c0_167 = arith.constant 0 : index
    %115 = tpu.strided_load %arg4[%c33_166, %c0_167] {strides = array<i32: 2, 1>} : memref<256x4xf32, #tpu.memory_space<vmem>>, vector<8x4xf32>
    %c8_168 = arith.constant 8 : index
    %c0_169 = arith.constant 0 : index
    %116 = vector.load %arg5[%c8_168, %c0_169] : memref<64x4xf32, #tpu.memory_space<vmem>>, vector<8x4xf32>
    tpu.vector_store %arg5[%c8_168, %c0_169], %115 {strides = array<i32>} : memref<64x4xf32, #tpu.memory_space<vmem>>, vector<8x4xf32>,
    %c65_170 = arith.constant 65 : index
    %c0_171 = arith.constant 0 : index
    %117 = tpu.strided_load %arg4[%c65_170, %c0_171] {strides = array<i32: 2, 1>} : memref<256x4xf32, #tpu.memory_space<vmem>>, vector<8x4xf32>
    %c16_172 = arith.constant 16 : index
    %c0_173 = arith.constant 0 : index
    %118 = vector.load %arg5[%c16_172, %c0_173] : memref<64x4xf32, #tpu.memory_space<vmem>>, vector<8x4xf32>
    tpu.vector_store %arg5[%c16_172, %c0_173], %117 {strides = array<i32>} : memref<64x4xf32, #tpu.memory_space<vmem>>, vector<8x4xf32>,
    %c97_174 = arith.constant 97 : index
    %c0_175 = arith.constant 0 : index
    %119 = tpu.strided_load %arg4[%c97_174, %c0_175] {strides = array<i32: 2, 1>} : memref<256x4xf32, #tpu.memory_space<vmem>>, vector<8x4xf32>
    %c24_176 = arith.constant 24 : index
    %c0_177 = arith.constant 0 : index
    %120 = vector.load %arg5[%c24_176, %c0_177] : memref<64x4xf32, #tpu.memory_space<vmem>>, vector<8x4xf32>
    tpu.vector_store %arg5[%c24_176, %c0_177], %119 {strides = array<i32>} : memref<64x4xf32, #tpu.memory_space<vmem>>, vector<8x4xf32>,
    %c129_178 = arith.constant 129 : index
    %c0_179 = arith.constant 0 : index
    %121 = tpu.strided_load %arg4[%c129_178, %c0_179] {strides = array<i32: 2, 1>} : memref<256x4xf32, #tpu.memory_space<vmem>>, vector<8x4xf32>
    %c32_180 = arith.constant 32 : index
    %c0_181 = arith.constant 0 : index
    %122 = vector.load %arg5[%c32_180, %c0_181] : memref<64x4xf32, #tpu.memory_space<vmem>>, vector<8x4xf32>
    tpu.vector_store %arg5[%c32_180, %c0_181], %121 {strides = array<i32>} : memref<64x4xf32, #tpu.memory_space<vmem>>, vector<8x4xf32>,
    %c161_182 = arith.constant 161 : index
    %c0_183 = arith.constant 0 : index
    %123 = tpu.strided_load %arg4[%c161_182, %c0_183] {strides = array<i32: 2, 1>} : memref<256x4xf32, #tpu.memory_space<vmem>>, vector<8x4xf32>
    %c40_184 = arith.constant 40 : index
    %c0_185 = arith.constant 0 : index
    %124 = vector.load %arg5[%c40_184, %c0_185] : memref<64x4xf32, #tpu.memory_space<vmem>>, vector<8x4xf32>
    tpu.vector_store %arg5[%c40_184, %c0_185], %123 {strides = array<i32>} : memref<64x4xf32, #tpu.memory_space<vmem>>, vector<8x4xf32>,
    %c193_186 = arith.constant 193 : index
    %c0_187 = arith.constant 0 : index
    %125 = tpu.strided_load %arg4[%c193_186, %c0_187] {strides = array<i32: 2, 1>} : memref<256x4xf32, #tpu.memory_space<vmem>>, vector<8x4xf32>
    %c48_188 = arith.constant 48 : index
    %c0_189 = arith.constant 0 : index
    %126 = vector.load %arg5[%c48_188, %c0_189] : memref<64x4xf32, #tpu.memory_space<vmem>>, vector<8x4xf32>
    tpu.vector_store %arg5[%c48_188, %c0_189], %125 {strides = array<i32>} : memref<64x4xf32, #tpu.memory_space<vmem>>, vector<8x4xf32>,
    %c225_190 = arith.constant 225 : index
    %c0_191 = arith.constant 0 : index
    %127 = tpu.strided_load %arg4[%c225_190, %c0_191] {strides = array<i32: 2, 1>} : memref<256x4xf32, #tpu.memory_space<vmem>>, vector<8x4xf32>
    %c56_192 = arith.constant 56 : index
    %c0_193 = arith.constant 0 : index
    %128 = vector.load %arg5[%c56_192, %c0_193] : memref<64x4xf32, #tpu.memory_space<vmem>>, vector<8x4xf32>
    tpu.vector_store %arg5[%c56_192, %c0_193], %127 {strides = array<i32>} : memref<64x4xf32, #tpu.memory_space<vmem>>, vector<8x4xf32>,
    %c0_194 = arith.constant 0 : index
    %c0_195 = arith.constant 0 : index
    %129 = vector.load %arg5[%c0_194, %c0_195] : memref<64x4xf32, #tpu.memory_space<vmem>>, vector<64x4xf32>
    %130 = tpu.transpose %129, [1, 0] : vector<64x4xf32> -> vector<4x64xf32>
    %c1_196 = arith.constant 1 : index
    %c1_197 = arith.constant 1 : index
    %c0_198 = arith.constant 0 : index
    %c0_199 = arith.constant 0 : index
    %131 = vector.load %arg3[%c1_196, %c1_197, %c0_198, %c0_199] : memref<2x4x4x64xf32, #tpu.memory_space<vmem>>, vector<1x1x4x64xf32>
    %132 = vector.shape_cast %131 : vector<1x1x4x64xf32> to vector<4x64xf32>
    %133 = vector.shape_cast %130 : vector<4x64xf32> to vector<1x1x4x64xf32>
    tpu.vector_store %arg3[%c1_196, %c1_197, %c0_198, %c0_199], %133 {strides = array<i32>} : memref<2x4x4x64xf32, #tpu.memory_space<vmem>>, vector<1x1x4x64xf32>,
    %c16_200 = arith.constant 16 : index
    %c0_201 = arith.constant 0 : index
    %134 = tpu.strided_load %arg4[%c16_200, %c0_201] {strides = array<i32: 2, 1>} : memref<256x4xf32, #tpu.memory_space<vmem>>, vector<8x4xf32>
    %c0_202 = arith.constant 0 : index
    %c0_203 = arith.constant 0 : index
    %135 = vector.load %arg5[%c0_202, %c0_203] : memref<64x4xf32, #tpu.memory_space<vmem>>, vector<8x4xf32>
    tpu.vector_store %arg5[%c0_202, %c0_203], %134 {strides = array<i32>} : memref<64x4xf32, #tpu.memory_space<vmem>>, vector<8x4xf32>,
    %c48_204 = arith.constant 48 : index
    %c0_205 = arith.constant 0 : index
    %136 = tpu.strided_load %arg4[%c48_204, %c0_205] {strides = array<i32: 2, 1>} : memref<256x4xf32, #tpu.memory_space<vmem>>, vector<8x4xf32>
    %c8_206 = arith.constant 8 : index
    %c0_207 = arith.constant 0 : index
    %137 = vector.load %arg5[%c8_206, %c0_207] : memref<64x4xf32, #tpu.memory_space<vmem>>, vector<8x4xf32>
    tpu.vector_store %arg5[%c8_206, %c0_207], %136 {strides = array<i32>} : memref<64x4xf32, #tpu.memory_space<vmem>>, vector<8x4xf32>,
    %c80_208 = arith.constant 80 : index
    %c0_209 = arith.constant 0 : index
    %138 = tpu.strided_load %arg4[%c80_208, %c0_209] {strides = array<i32: 2, 1>} : memref<256x4xf32, #tpu.memory_space<vmem>>, vector<8x4xf32>
    %c16_210 = arith.constant 16 : index
    %c0_211 = arith.constant 0 : index
    %139 = vector.load %arg5[%c16_210, %c0_211] : memref<64x4xf32, #tpu.memory_space<vmem>>, vector<8x4xf32>
    tpu.vector_store %arg5[%c16_210, %c0_211], %138 {strides = array<i32>} : memref<64x4xf32, #tpu.memory_space<vmem>>, vector<8x4xf32>,
    %c112_212 = arith.constant 112 : index
    %c0_213 = arith.constant 0 : index
    %140 = tpu.strided_load %arg4[%c112_212, %c0_213] {strides = array<i32: 2, 1>} : memref<256x4xf32, #tpu.memory_space<vmem>>, vector<8x4xf32>
    %c24_214 = arith.constant 24 : index
    %c0_215 = arith.constant 0 : index
    %141 = vector.load %arg5[%c24_214, %c0_215] : memref<64x4xf32, #tpu.memory_space<vmem>>, vector<8x4xf32>
    tpu.vector_store %arg5[%c24_214, %c0_215], %140 {strides = array<i32>} : memref<64x4xf32, #tpu.memory_space<vmem>>, vector<8x4xf32>,
    %c144_216 = arith.constant 144 : index
    %c0_217 = arith.constant 0 : index
    %142 = tpu.strided_load %arg4[%c144_216, %c0_217] {strides = array<i32: 2, 1>} : memref<256x4xf32, #tpu.memory_space<vmem>>, vector<8x4xf32>
    %c32_218 = arith.constant 32 : index
    %c0_219 = arith.constant 0 : index
    %143 = vector.load %arg5[%c32_218, %c0_219] : memref<64x4xf32, #tpu.memory_space<vmem>>, vector<8x4xf32>
    tpu.vector_store %arg5[%c32_218, %c0_219], %142 {strides = array<i32>} : memref<64x4xf32, #tpu.memory_space<vmem>>, vector<8x4xf32>,
    %c176_220 = arith.constant 176 : index
    %c0_221 = arith.constant 0 : index
    %144 = tpu.strided_load %arg4[%c176_220, %c0_221] {strides = array<i32: 2, 1>} : memref<256x4xf32, #tpu.memory_space<vmem>>, vector<8x4xf32>
    %c40_222 = arith.constant 40 : index
    %c0_223 = arith.constant 0 : index
    %145 = vector.load %arg5[%c40_222, %c0_223] : memref<64x4xf32, #tpu.memory_space<vmem>>, vector<8x4xf32>
    tpu.vector_store %arg5[%c40_222, %c0_223], %144 {strides = array<i32>} : memref<64x4xf32, #tpu.memory_space<vmem>>, vector<8x4xf32>,
    %c208_224 = arith.constant 208 : index
    %c0_225 = arith.constant 0 : index
    %146 = tpu.strided_load %arg4[%c208_224, %c0_225] {strides = array<i32: 2, 1>} : memref<256x4xf32, #tpu.memory_space<vmem>>, vector<8x4xf32>
    %c48_226 = arith.constant 48 : index
    %c0_227 = arith.constant 0 : index
    %147 = vector.load %arg5[%c48_226, %c0_227] : memref<64x4xf32, #tpu.memory_space<vmem>>, vector<8x4xf32>
    tpu.vector_store %arg5[%c48_226, %c0_227], %146 {strides = array<i32>} : memref<64x4xf32, #tpu.memory_space<vmem>>, vector<8x4xf32>,
    %c240_228 = arith.constant 240 : index
    %c0_229 = arith.constant 0 : index
    %148 = tpu.strided_load %arg4[%c240_228, %c0_229] {strides = array<i32: 2, 1>} : memref<256x4xf32, #tpu.memory_space<vmem>>, vector<8x4xf32>
    %c56_230 = arith.constant 56 : index
    %c0_231 = arith.constant 0 : index
    %149 = vector.load %arg5[%c56_230, %c0_231] : memref<64x4xf32, #tpu.memory_space<vmem>>, vector<8x4xf32>
    tpu.vector_store %arg5[%c56_230, %c0_231], %148 {strides = array<i32>} : memref<64x4xf32, #tpu.memory_space<vmem>>, vector<8x4xf32>,
    %c0_232 = arith.constant 0 : index
    %c0_233 = arith.constant 0 : index
    %150 = vector.load %arg5[%c0_232, %c0_233] : memref<64x4xf32, #tpu.memory_space<vmem>>, vector<64x4xf32>
    %151 = tpu.transpose %150, [1, 0] : vector<64x4xf32> -> vector<4x64xf32>
    %c1_234 = arith.constant 1 : index
    %c2_235 = arith.constant 2 : index
    %c0_236 = arith.constant 0 : index
    %c0_237 = arith.constant 0 : index
    %152 = vector.load %arg3[%c1_234, %c2_235, %c0_236, %c0_237] : memref<2x4x4x64xf32, #tpu.memory_space<vmem>>, vector<1x1x4x64xf32>
    %153 = vector.shape_cast %152 : vector<1x1x4x64xf32> to vector<4x64xf32>
    %154 = vector.shape_cast %151 : vector<4x64xf32> to vector<1x1x4x64xf32>
    tpu.vector_store %arg3[%c1_234, %c2_235, %c0_236, %c0_237], %154 {strides = array<i32>} : memref<2x4x4x64xf32, #tpu.memory_space<vmem>>, vector<1x1x4x64xf32>,
    %c17_238 = arith.constant 17 : index
    %c0_239 = arith.constant 0 : index
    %155 = tpu.strided_load %arg4[%c17_238, %c0_239] {strides = array<i32: 2, 1>} : memref<256x4xf32, #tpu.memory_space<vmem>>, vector<8x4xf32>
    %c0_240 = arith.constant 0 : index
    %c0_241 = arith.constant 0 : index
    %156 = vector.load %arg5[%c0_240, %c0_241] : memref<64x4xf32, #tpu.memory_space<vmem>>, vector<8x4xf32>
    tpu.vector_store %arg5[%c0_240, %c0_241], %155 {strides = array<i32>} : memref<64x4xf32, #tpu.memory_space<vmem>>, vector<8x4xf32>,
    %c49_242 = arith.constant 49 : index
    %c0_243 = arith.constant 0 : index
    %157 = tpu.strided_load %arg4[%c49_242, %c0_243] {strides = array<i32: 2, 1>} : memref<256x4xf32, #tpu.memory_space<vmem>>, vector<8x4xf32>
    %c8_244 = arith.constant 8 : index
    %c0_245 = arith.constant 0 : index
    %158 = vector.load %arg5[%c8_244, %c0_245] : memref<64x4xf32, #tpu.memory_space<vmem>>, vector<8x4xf32>
    tpu.vector_store %arg5[%c8_244, %c0_245], %157 {strides = array<i32>} : memref<64x4xf32, #tpu.memory_space<vmem>>, vector<8x4xf32>,
    %c81_246 = arith.constant 81 : index
    %c0_247 = arith.constant 0 : index
    %159 = tpu.strided_load %arg4[%c81_246, %c0_247] {strides = array<i32: 2, 1>} : memref<256x4xf32, #tpu.memory_space<vmem>>, vector<8x4xf32>
    %c16_248 = arith.constant 16 : index
    %c0_249 = arith.constant 0 : index
    %160 = vector.load %arg5[%c16_248, %c0_249] : memref<64x4xf32, #tpu.memory_space<vmem>>, vector<8x4xf32>
    tpu.vector_store %arg5[%c16_248, %c0_249], %159 {strides = array<i32>} : memref<64x4xf32, #tpu.memory_space<vmem>>, vector<8x4xf32>,
    %c113_250 = arith.constant 113 : index
    %c0_251 = arith.constant 0 : index
    %161 = tpu.strided_load %arg4[%c113_250, %c0_251] {strides = array<i32: 2, 1>} : memref<256x4xf32, #tpu.memory_space<vmem>>, vector<8x4xf32>
    %c24_252 = arith.constant 24 : index
    %c0_253 = arith.constant 0 : index
    %162 = vector.load %arg5[%c24_252, %c0_253] : memref<64x4xf32, #tpu.memory_space<vmem>>, vector<8x4xf32>
    tpu.vector_store %arg5[%c24_252, %c0_253], %161 {strides = array<i32>} : memref<64x4xf32, #tpu.memory_space<vmem>>, vector<8x4xf32>,
    %c145_254 = arith.constant 145 : index
    %c0_255 = arith.constant 0 : index
    %163 = tpu.strided_load %arg4[%c145_254, %c0_255] {strides = array<i32: 2, 1>} : memref<256x4xf32, #tpu.memory_space<vmem>>, vector<8x4xf32>
    %c32_256 = arith.constant 32 : index
    %c0_257 = arith.constant 0 : index
    %164 = vector.load %arg5[%c32_256, %c0_257] : memref<64x4xf32, #tpu.memory_space<vmem>>, vector<8x4xf32>
    tpu.vector_store %arg5[%c32_256, %c0_257], %163 {strides = array<i32>} : memref<64x4xf32, #tpu.memory_space<vmem>>, vector<8x4xf32>,
    %c177_258 = arith.constant 177 : index
    %c0_259 = arith.constant 0 : index
    %165 = tpu.strided_load %arg4[%c177_258, %c0_259] {strides = array<i32: 2, 1>} : memref<256x4xf32, #tpu.memory_space<vmem>>, vector<8x4xf32>
    %c40_260 = arith.constant 40 : index
    %c0_261 = arith.constant 0 : index
    %166 = vector.load %arg5[%c40_260, %c0_261] : memref<64x4xf32, #tpu.memory_space<vmem>>, vector<8x4xf32>
    tpu.vector_store %arg5[%c40_260, %c0_261], %165 {strides = array<i32>} : memref<64x4xf32, #tpu.memory_space<vmem>>, vector<8x4xf32>,
    %c209_262 = arith.constant 209 : index
    %c0_263 = arith.constant 0 : index
    %167 = tpu.strided_load %arg4[%c209_262, %c0_263] {strides = array<i32: 2, 1>} : memref<256x4xf32, #tpu.memory_space<vmem>>, vector<8x4xf32>
    %c48_264 = arith.constant 48 : index
    %c0_265 = arith.constant 0 : index
    %168 = vector.load %arg5[%c48_264, %c0_265] : memref<64x4xf32, #tpu.memory_space<vmem>>, vector<8x4xf32>
    tpu.vector_store %arg5[%c48_264, %c0_265], %167 {strides = array<i32>} : memref<64x4xf32, #tpu.memory_space<vmem>>, vector<8x4xf32>,
    %c241_266 = arith.constant 241 : index
    %c0_267 = arith.constant 0 : index
    %169 = tpu.strided_load %arg4[%c241_266, %c0_267] {strides = array<i32: 2, 1>} : memref<256x4xf32, #tpu.memory_space<vmem>>, vector<8x4xf32>
    %c56_268 = arith.constant 56 : index
    %c0_269 = arith.constant 0 : index
    %170 = vector.load %arg5[%c56_268, %c0_269] : memref<64x4xf32, #tpu.memory_space<vmem>>, vector<8x4xf32>
    tpu.vector_store %arg5[%c56_268, %c0_269], %169 {strides = array<i32>} : memref<64x4xf32, #tpu.memory_space<vmem>>, vector<8x4xf32>,
    %c0_270 = arith.constant 0 : index
    %c0_271 = arith.constant 0 : index
    %171 = vector.load %arg5[%c0_270, %c0_271] : memref<64x4xf32, #tpu.memory_space<vmem>>, vector<64x4xf32>
    %172 = tpu.transpose %171, [1, 0] : vector<64x4xf32> -> vector<4x64xf32>
    %c1_272 = arith.constant 1 : index
    %c3_273 = arith.constant 3 : index
    %c0_274 = arith.constant 0 : index
    %c0_275 = arith.constant 0 : index
    %173 = vector.load %arg3[%c1_272, %c3_273, %c0_274, %c0_275] : memref<2x4x4x64xf32, #tpu.memory_space<vmem>>, vector<1x1x4x64xf32>
    %174 = vector.shape_cast %173 : vector<1x1x4x64xf32> to vector<4x64xf32>
    %175 = vector.shape_cast %172 : vector<4x64xf32> to vector<1x1x4x64xf32>
    tpu.vector_store %arg3[%c1_272, %c3_273, %c0_274, %c0_275], %175 {strides = array<i32>} : memref<2x4x4x64xf32, #tpu.memory_space<vmem>>, vector<1x1x4x64xf32>,
    return
  }
  func.func @transform_0(%arg0: i32, %arg1: i32) -> (i32, i32, i32) {
    %c0_i32 = arith.constant 0 : i32
    %c0_i32_0 = arith.constant 0 : i32
    return %arg0, %arg1, %c0_i32 : i32, i32, i32
  }
  func.func @transform_1(%arg0: i32, %arg1: i32) -> (i32, i32, i32, i32) {
    %c0_i32 = arith.constant 0 : i32
    %c0_i32_0 = arith.constant 0 : i32
    %c0_i32_1 = arith.constant 0 : i32
    return %arg0, %c0_i32, %arg1, %c0_i32_0 : i32, i32, i32, i32
  }
}

</mosaic_0001>

<bundles_post_ra>
// kernel: tpu_custom_call.1
= control target key start
LH: loop header
LB: loop body
LE: loop exit
PB: predicated region body
PF: predicated region fallthrough
CT: control target
= control target key end

     0   :  { %6 = vsyncpa [#allocation5], 0  ;;  %s1050_s0 = inlined_call_operand.hbm [shape: f32[2,4,256], index: 0, kind: input, shape index: {}]   ;;  %s1051_s1 = inlined_call_operand.hbm [shape: f32[2,4,4,64], index: 1, kind: output, shape index: {}]  }
   0x1   :  { %7 = vsyncpa [#allocation6], 0  ;;  %s794_s6 = smov [#allocation4]   ;;  %s746_s10 = scalar_lea.hbm %s1050_s0, 256 }
   0x2   :  { %s13_s7 = sshll.u32 %s794_s6, 4  ;;  %p747_p0 = scmp.ne.s32.totalorder %s1050_s0, %s746_s10  ;;  %s14_s7 = int_to_ptr.vmem [resolvable:$true] %s13_s7 }
   0x3   :  { %p750_p1 = scmp.lt.u32.totalorder %s746_s10, %s1050_s0 }
   0x5   :  { %p752_p2 = pnand %p750_p1, %p747_p0 }
   0x7   :  { %755 = shalt.err (!%p752_p2)
}
   0x8   :  { %s756_s15 = scalar_lea.vmem %s14_s7, 256  ;;  %p761_p4 = scmp.lt.s32.totalorder %s14_s7, %s14_s7 }
   0x9   :  { %p757_p3 = scmp.ne.s32.totalorder %s14_s7, %s756_s15  ;;  %p762_p5 = scmp.lt.s32.totalorder %s756_s15, %s756_s15 }
   0xb   :  { %p763_p6 = por %p762_p5, %p761_p4 }
   0xd   :  { %p764_p7 = pnand %p763_p6, %p757_p3 }
   0xf   :  { %767 = shalt.err (!%p764_p7)
}
  0x10   :  { %s795_s16 = smov 128   ;;  %s796_s17 = smov 8  }
  0x11   :  { %19 = dma.hbm_to_vmem [thread:$0]  %s1050_s0, 256, %s14_s7, [#allocation5], %s795_s16, %s795_s16, %s796_s17  }
  0x12   :  { %790 = dma.done.wait [#allocation5], 256  }
  0x13   :  { %791 = vsyncadd [#allocation5], 4294967040  ;;  %v23_v0 = vld [vmem:[#allocation4] sm:$0xff]  ;;  %v822_v2 = vld [vmem:[#allocation4 + $0x8] sm:$0xff]  ;;  %vm91_vm0 = vcmask 31744   ;;  %vm187_vm1 = vcmask 519168  }
  0x14   :  { %27 = vxpose.xlu0.b32.start.end [1/1] (short) %v23_v0, 128  ;;  %v25_v1 = vcombine.high %v23_v0, %v23_v0  ;;  %v390_v29 = vcombine.high %v822_v2, %v822_v2  ;;  %s797_s0 = smov [#allocation7]  }
  0x15   :  { %s725_s20 = sshll.u32 %s797_s0, 4  ;;  %s726_s20 = int_to_ptr.vmem [resolvable:$true] %s725_s20 }
  0x16   :  { %s768_s21 = scalar_lea.vmem %s726_s20, 512  ;;  %p773_p9 = scmp.lt.s32.totalorder %s726_s20, %s726_s20 }
  0x17   :  { %p769_p8 = scmp.ne.s32.totalorder %s726_s20, %s768_s21  ;;  %p774_p10 = scmp.lt.s32.totalorder %s768_s21, %s768_s21 }
  0x19   :  { %p775_p11 = por %p774_p10, %p773_p9 }
  0x1b   :  { %p776_p12 = pnand %p775_p11, %p769_p8 }
  0x51   :  { %59 = vxpose.xlu0.b32.start.end [1/1] (short) %v25_v1, 128 }
  0x8e   :  { %392 = vxpose.xlu0.b32.start.end [1/1] (short) %v822_v2, 128 }
  0x94   :  { %v43_v3 = vpop.trf.xlu0 }
  0x95   :  { %92 = vst.msk [vmem:[#allocation2] sm:$0xff] %vm91_vm0, %v43_v3 }
  0x98   :  { %v44_v4 = vpop.trf.xlu0 }
  0x99   :  { %93 = vst.msk [vmem:[#allocation2 + $0x8] sm:$0xff] %vm91_vm0, %v44_v4 }
  0x9c   :  { %v45_v5 = vpop.trf.xlu0 }
  0x9d   :  { %94 = vst.msk [vmem:[#allocation2 + $0x10] sm:$0xff] %vm91_vm0, %v45_v5 }
  0xa0   :  { %v46_v6 = vpop.trf.xlu0  ;;  %v124_v7 = vld [vmem:[#allocation2] ss:$2 sm:$0xff]  ;;  %v190_v11 = vld [vmem:[#allocation2 + $0x1] ss:$2 sm:$0xff] }
  0xa1   :  { %95 = vst.msk [vmem:[#allocation2 + $0x18] sm:$0xff] %vm91_vm0, %v46_v6  ;;  %125 = vst.msk [vmem:[#allocation3] sm:$0xff] %vm91_vm0, %v124_v7 }
  0xa4   :  { %v47_v8 = vpop.trf.xlu0 }
  0xa5   :  { %96 = vst.msk [vmem:[#allocation2 + $0x20] sm:$0xff] %vm91_vm0, %v47_v8 }
  0xa8   :  { %v48_v9 = vpop.trf.xlu0  ;;  %v147_v10 = vld [vmem:[#allocation3] sm:$0xff]  ;;  %v256_v15 = vld [vmem:[#allocation2 + $0x10] ss:$2 sm:$0xff]  ;;  %v322_v18 = vld [vmem:[#allocation2 + $0x11] ss:$2 sm:$0xff] }
  0xa9   :  { %97 = vst.msk [vmem:[#allocation2 + $0x28] sm:$0xff] %vm91_vm0, %v48_v9  ;;  %155 = vxpose.xlu1.b32.start [1/8] (short) (narrow) %v147_v10, 8  ;;  %191 = vst.msk [vmem:[#allocation3] sm:$0xff] %vm91_vm0, %v190_v11 }
  0xac   :  { %v49_v12 = vpop.trf.xlu0 }
  0xad   :  { %98 = vst.msk [vmem:[#allocation2 + $0x30] sm:$0xff] %vm91_vm0, %v49_v12 }
  0xb0   :  { %v50_v13 = vpop.trf.xlu0  ;;  %v127_v14 = vld [vmem:[#allocation2 + $0x20] ss:$2 sm:$0xff]  ;;  %v193_v21 = vld [vmem:[#allocation2 + $0x21] ss:$2 sm:$0xff] }
  0xb1   :  { %v834_v16 = vld [vmem:[#allocation3] sm:$0xff]  ;;  %99 = vst.msk [vmem:[#allocation2 + $0x38] sm:$0xff] %vm91_vm0, %v50_v13  ;;  %128 = vst.msk [vmem:[#allocation3 + $0x8] sm:$0xff] %vm91_vm0, %v127_v14 }
  0xb2   :  { %257 = vst.msk [vmem:[#allocation3] sm:$0xff] %vm91_vm0, %v256_v15 }
  0xb4   :  { %v51_v17 = vpop.trf.xlu0 }
  0xb5   :  { %100 = vst.msk [vmem:[#allocation2 + $0x40] sm:$0xff] %vm91_vm0, %v51_v17 }
  0xb8   :  { %v52_v19 = vpop.trf.xlu0  ;;  %v148_v20 = vld [vmem:[#allocation3 + $0x8] sm:$0xff]  ;;  %v259_v27 = vld [vmem:[#allocation2 + $0x30] ss:$2 sm:$0xff]  ;;  %v325_v33 = vld [vmem:[#allocation2 + $0x31] ss:$2 sm:$0xff] }
  0xb9   :  { %v840_v22 = vld [vmem:[#allocation3] sm:$0xff]  ;;  %101 = vst.msk [vmem:[#allocation2 + $0x48] sm:$0xff] %vm91_vm0, %v52_v19  ;;  %156 = vxpose.xlu1.b32.cont [2/8] (short) (narrow) %v148_v20, 8  ;;  %194 = vst.msk [vmem:[#allocation3 + $0x8] sm:$0xff] %vm91_vm0, %v193_v21 }
  0xba   :  { %323 = vst.msk [vmem:[#allocation3] sm:$0xff] %vm91_vm0, %v322_v18 }
  0xbc   :  { %v53_v23 = vpop.trf.xlu0 }
  0xbd   :  { %102 = vst.msk [vmem:[#allocation2 + $0x50] sm:$0xff] %vm91_vm0, %v53_v23 }
  0xc0   :  { %v54_v24 = vpop.trf.xlu0  ;;  %v130_v25 = vld [vmem:[#allocation2 + $0x40] ss:$2 sm:$0xff]  ;;  %v196_v32 = vld [vmem:[#allocation2 + $0x41] ss:$2 sm:$0xff] }
  0xc1   :  { %103 = vst.msk [vmem:[#allocation2 + $0x58] sm:$0xff] %vm91_vm0, %v54_v24  ;;  %131 = vst.msk [vmem:[#allocation3 + $0x10] sm:$0xff] %vm91_vm0, %v130_v25  ;;  %v848_v26 = vld [vmem:[#allocation3 + $0x8] sm:$0xff] }
  0xc2   :  { %260 = vst.msk [vmem:[#allocation3 + $0x8] sm:$0xff] %vm91_vm0, %v259_v27 }
  0xc4   :  { %v55_v28 = vpop.trf.xlu0 }
  0xc5   :  { %104 = vst.msk [vmem:[#allocation2 + $0x60] sm:$0xff] %vm91_vm0, %v55_v28 }
  0xc8   :  { %v56_v30 = vpop.trf.xlu0  ;;  %v149_v31 = vld [vmem:[#allocation3 + $0x10] sm:$0xff] }
  0xc9   :  { %105 = vst.msk [vmem:[#allocation2 + $0x68] sm:$0xff] %vm91_vm0, %v56_v30  ;;  %157 = vxpose.xlu1.b32.cont [3/8] (short) (narrow) %v149_v31, 8  ;;  %197 = vst.msk [vmem:[#allocation3 + $0x10] sm:$0xff] %vm91_vm0, %v196_v32  ;;  %v856_v34 = vld [vmem:[#allocation3 + $0x8] sm:$0xff]  ;;  %v262_v39 = vld [vmem:[#allocation2 + $0x50] ss:$2 sm:$0xff] }
  0xca   :  { %326 = vst.msk [vmem:[#allocation3 + $0x8] sm:$0xff] %vm91_vm0, %v325_v33  ;;  %v328_v41 = vld [vmem:[#allocation2 + $0x51] ss:$2 sm:$0xff]  ;;  %v919_v30 = vld [vmem:[#allocation3] sm:$0xff] }
  0xcc   :  { %v57_v35 = vpop.trf.xlu0  ;;  %424 = vxpose.xlu0.b32.start.end [1/1] (short) %v390_v29, 128 }
  0xcd   :  { %106 = vst.msk [vmem:[#allocation2 + $0x70] sm:$0xff] %vm91_vm0, %v57_v35 }
  0xd0   :  { %v58_v36 = vpop.trf.xlu0  ;;  %v133_v37 = vld [vmem:[#allocation2 + $0x60] ss:$2 sm:$0xff]  ;;  %v860_v38 = vld [vmem:[#allocation3 + $0x10] sm:$0xff]  ;;  %v199_v44 = vld [vmem:[#allocation2 + $0x61] ss:$2 sm:$0xff] }
  0xd1   :  { %107 = vst.msk [vmem:[#allocation2 + $0x78] sm:$0xff] %vm91_vm0, %v58_v36  ;;  %134 = vst.msk [vmem:[#allocation3 + $0x18] sm:$0xff] %vm91_vm0, %v133_v37 }
  0xd2   :  { %263 = vst.msk [vmem:[#allocation3 + $0x10] sm:$0xff] %vm91_vm0, %v262_v39 }
  0xd4   :  { %v75_v40 = vpop.trf.xlu0 }
  0xd5   :  { %108 = vst.msk [vmem:[#allocation2 + $0x80] sm:$0xff] %vm91_vm0, %v75_v40 }
  0xd8   :  { %v76_v42 = vpop.trf.xlu0  ;;  %v150_v43 = vld [vmem:[#allocation3 + $0x18] sm:$0xff] }
  0xd9   :  { %v866_v45 = vld [vmem:[#allocation3 + $0x10] sm:$0xff]  ;;  %109 = vst.msk [vmem:[#allocation2 + $0x88] sm:$0xff] %vm91_vm0, %v76_v42  ;;  %158 = vxpose.xlu1.b32.cont [4/8] (short) (narrow) %v150_v43, 8  ;;  %200 = vst.msk [vmem:[#allocation3 + $0x18] sm:$0xff] %vm91_vm0, %v199_v44 }
  0xda   :  { %329 = vst.msk [vmem:[#allocation3 + $0x10] sm:$0xff] %vm91_vm0, %v328_v41  ;;  %v265_v50 = vld [vmem:[#allocation2 + $0x70] ss:$2 sm:$0xff]  ;;  %v331_v52 = vld [vmem:[#allocation2 + $0x71] ss:$2 sm:$0xff] }
  0xdc   :  { %v77_v46 = vpop.trf.xlu0 }
  0xdd   :  { %110 = vst.msk [vmem:[#allocation2 + $0x90] sm:$0xff] %vm91_vm0, %v77_v46 }
  0xe0   :  { %v78_v47 = vpop.trf.xlu0  ;;  %v136_v48 = vld [vmem:[#allocation2 + $0x80] ss:$2 sm:$0xff]  ;;  %v872_v49 = vld [vmem:[#allocation3 + $0x18] sm:$0xff]  ;;  %v202_v55 = vld [vmem:[#allocation2 + $0x81] ss:$2 sm:$0xff] }
  0xe1   :  { %111 = vst.msk [vmem:[#allocation2 + $0x98] sm:$0xff] %vm91_vm0, %v78_v47  ;;  %137 = vst.msk [vmem:[#allocation3 + $0x20] sm:$0xff] %vm91_vm0, %v136_v48 }
  0xe2   :  { %266 = vst.msk [vmem:[#allocation3 + $0x18] sm:$0xff] %vm91_vm0, %v265_v50 }
  0xe4   :  { %v79_v51 = vpop.trf.xlu0 }
  0xe5   :  { %112 = vst.msk [vmem:[#allocation2 + $0xa0] sm:$0xff] %vm91_vm0, %v79_v51 }
  0xe8   :  { %v80_v53 = vpop.trf.xlu0  ;;  %v151_v54 = vld [vmem:[#allocation3 + $0x20] sm:$0xff]  ;;  %v268_v61 = vld [vmem:[#allocation2 + $0x90] ss:$2 sm:$0xff]  ;;  %v334_v63 = vld [vmem:[#allocation2 + $0x91] ss:$2 sm:$0xff] }
  0xe9   :  { %v878_v56 = vld [vmem:[#allocation3 + $0x18] sm:$0xff]  ;;  %113 = vst.msk [vmem:[#allocation2 + $0xa8] sm:$0xff] %vm91_vm0, %v80_v53  ;;  %159 = vxpose.xlu1.b32.cont [5/8] (short) (narrow) %v151_v54, 8  ;;  %203 = vst.msk [vmem:[#allocation3 + $0x20] sm:$0xff] %vm91_vm0, %v202_v55  ;;  %v347_v54 = vld [vmem:[#allocation3 + $0x10] sm:$0xff] }
  0xea   :  { %332 = vst.msk [vmem:[#allocation3 + $0x18] sm:$0xff] %vm91_vm0, %v331_v52 }
  0xec   :  { %v81_v57 = vpop.trf.xlu0 }
  0xed   :  { %114 = vst.msk [vmem:[#allocation2 + $0xb0] sm:$0xff] %vm91_vm0, %v81_v57 }
  0xf0   :  { %v82_v58 = vpop.trf.xlu0  ;;  %v139_v59 = vld [vmem:[#allocation2 + $0xa0] ss:$2 sm:$0xff]  ;;  %v205_v2 = vld [vmem:[#allocation2 + $0xa1] ss:$2 sm:$0xff] }
  0xf1   :  { %v884_v60 = vld [vmem:[#allocation3 + $0x20] sm:$0xff]  ;;  %115 = vst.msk [vmem:[#allocation2 + $0xb8] sm:$0xff] %vm91_vm0, %v82_v58  ;;  %140 = vst.msk [vmem:[#allocation3 + $0x28] sm:$0xff] %vm91_vm0, %v139_v59 }
  0xf2   :  { %269 = vst.msk [vmem:[#allocation3 + $0x20] sm:$0xff] %vm91_vm0, %v268_v61 }
  0xf4   :  { %v83_v62 = vpop.trf.xlu0 }
  0xf5   :  { %116 = vst.msk [vmem:[#allocation2 + $0xc0] sm:$0xff] %vm91_vm0, %v83_v62 }
  0xf8   :  { %v84_v0 = vpop.trf.xlu0  ;;  %v152_v1 = vld [vmem:[#allocation3 + $0x28] sm:$0xff]  ;;  %v271_v8 = vld [vmem:[#allocation2 + $0xb0] ss:$2 sm:$0xff]  ;;  %v337_v10 = vld [vmem:[#allocation2 + $0xb1] ss:$2 sm:$0xff] }
  0xf9   :  { %v890_v3 = vld [vmem:[#allocation3 + $0x20] sm:$0xff]  ;;  %117 = vst.msk [vmem:[#allocation2 + $0xc8] sm:$0xff] %vm91_vm0, %v84_v0  ;;  %160 = vxpose.xlu1.b32.cont [6/8] (short) (narrow) %v152_v1, 8  ;;  %206 = vst.msk [vmem:[#allocation3 + $0x28] sm:$0xff] %vm91_vm0, %v205_v2 }
  0xfa   :  { %335 = vst.msk [vmem:[#allocation3 + $0x20] sm:$0xff] %vm91_vm0, %v334_v63 }
  0xfc   :  { %v85_v4 = vpop.trf.xlu0 }
  0xfd   :  { %118 = vst.msk [vmem:[#allocation2 + $0xd0] sm:$0xff] %vm91_vm0, %v85_v4 }
 0x100   :  { %v86_v5 = vpop.trf.xlu0  ;;  %v142_v6 = vld [vmem:[#allocation2 + $0xc0] ss:$2 sm:$0xff]  ;;  %v208_v13 = vld [vmem:[#allocation2 + $0xc1] ss:$2 sm:$0xff] }
 0x101   :  { %v896_v7 = vld [vmem:[#allocation3 + $0x28] sm:$0xff]  ;;  %119 = vst.msk [vmem:[#allocation2 + $0xd8] sm:$0xff] %vm91_vm0, %v86_v5  ;;  %143 = vst.msk [vmem:[#allocation3 + $0x30] sm:$0xff] %vm91_vm0, %v142_v6 }
 0x102   :  { %272 = vst.msk [vmem:[#allocation3 + $0x28] sm:$0xff] %vm91_vm0, %v271_v8 }
 0x104   :  { %v87_v9 = vpop.trf.xlu0 }
 0x105   :  { %120 = vst.msk [vmem:[#allocation2 + $0xe0] sm:$0xff] %vm91_vm0, %v87_v9 }
 0x108   :  { %v88_v11 = vpop.trf.xlu0  ;;  %v153_v12 = vld [vmem:[#allocation3 + $0x30] sm:$0xff] }
 0x109   :  { %v902_v14 = vld [vmem:[#allocation3 + $0x28] sm:$0xff]  ;;  %121 = vst.msk [vmem:[#allocation2 + $0xe8] sm:$0xff] %vm91_vm0, %v88_v11  ;;  %161 = vxpose.xlu1.b32.cont [7/8] (short) (narrow) %v153_v12, 8  ;;  %209 = vst.msk [vmem:[#allocation3 + $0x30] sm:$0xff] %vm91_vm0, %v208_v13  ;;  %v274_v20 = vld [vmem:[#allocation2 + $0xd0] ss:$2 sm:$0xff] }
 0x10a   :  { %338 = vst.msk [vmem:[#allocation3 + $0x28] sm:$0xff] %vm91_vm0, %v337_v10  ;;  %v340_v23 = vld [vmem:[#allocation2 + $0xd1] ss:$2 sm:$0xff]  ;;  %v349_v11 = vld [vmem:[#allocation3 + $0x20] sm:$0xff] }
 0x10c   :  { %v89_v15 = vpop.trf.xlu0 }
 0x10d   :  { %122 = vst.msk [vmem:[#allocation2 + $0xf0] sm:$0xff] %vm91_vm0, %v89_v15 }
 0x110   :  { %v90_v17 = vpop.trf.xlu0  ;;  %v145_v18 = vld [vmem:[#allocation2 + $0xe0] ss:$2 sm:$0xff]  ;;  %v219_v19 = vld [vmem:[#allocation3 + $0x30] sm:$0xff]  ;;  %v211_v27 = vld [vmem:[#allocation2 + $0xe1] ss:$2 sm:$0xff] }
 0x111   :  { %123 = vst.msk [vmem:[#allocation2 + $0xf8] sm:$0xff] %vm91_vm0, %v90_v17  ;;  %146 = vst.msk [vmem:[#allocation3 + $0x38] sm:$0xff] %vm91_vm0, %v145_v18 }
 0x112   :  { %275 = vst.msk [vmem:[#allocation3 + $0x30] sm:$0xff] %vm91_vm0, %v274_v20 }
 0x114   :  { %v408_v21 = vpop.trf.xlu0 }
 0x115   :  { %456 = vst.msk [vmem:[#allocation2] sm:$0xff] %vm91_vm0, %v408_v21 }
 0x118   :  { %v409_v24 = vpop.trf.xlu0  ;;  %v154_v25 = vld [vmem:[#allocation3 + $0x38] sm:$0xff] }
 0x119   :  { %v912_v28 = vld [vmem:[#allocation3 + $0x30] sm:$0xff]  ;;  %457 = vst.msk [vmem:[#allocation2 + $0x8] sm:$0xff] %vm91_vm0, %v409_v24  ;;  %162 = vxpose.xlu1.b32.end [8/8] (short) (narrow) %v154_v25, 8  ;;  %212 = vst.msk [vmem:[#allocation3 + $0x38] sm:$0xff] %vm91_vm0, %v211_v27  ;;  %v350_v25 = vld [vmem:[#allocation3 + $0x28] sm:$0xff] }
 0x11a   :  { %341 = vst.msk [vmem:[#allocation3 + $0x30] sm:$0xff] %vm91_vm0, %v340_v23  ;;  %v277_v35 = vld [vmem:[#allocation2 + $0xf0] ss:$2 sm:$0xff] }
 0x11c   :  { %v410_v29 = vpop.trf.xlu0 }
 0x11d   :  { %458 = vst.msk [vmem:[#allocation2 + $0x10] sm:$0xff] %vm91_vm0, %v410_v29  ;;  %221 = vxpose.xlu1.b32.start [1/8] (short) (narrow) %v834_v16, 8 }
 0x120   :  { %v488_v31 = vld [vmem:[#allocation2] ss:$2 sm:$0xff]  ;;  %v411_v32 = vpop.trf.xlu0  ;;  %v220_v33 = vld [vmem:[#allocation3 + $0x38] sm:$0xff]  ;;  %v546_v39 = vld [vmem:[#allocation2 + $0x1] ss:$2 sm:$0xff] }
 0x121   :  { %489 = vst.msk [vmem:[#allocation3] sm:$0xff] %vm91_vm0, %v488_v31  ;;  %459 = vst.msk [vmem:[#allocation2 + $0x18] sm:$0xff] %vm91_vm0, %v411_v32  ;;  %222 = vxpose.xlu1.b32.cont [2/8] (short) (narrow) %v848_v26, 8  ;;  %v343_v26 = vld [vmem:[#allocation2 + $0xf1] ss:$2 sm:$0xff] }
 0x122   :  { %278 = vst.msk [vmem:[#allocation3 + $0x38] sm:$0xff] %vm91_vm0, %v277_v35  ;;  %v351_v32 = vld [vmem:[#allocation3 + $0x30] sm:$0xff] }
 0x124   :  { %v412_v36 = vpop.trf.xlu0 }
 0x125   :  { %460 = vst.msk [vmem:[#allocation2 + $0x20] sm:$0xff] %vm91_vm0, %v412_v36  ;;  %223 = vxpose.xlu1.b32.cont [3/8] (short) (narrow) %v860_v38, 8  ;;  %v937_v38 = vld [vmem:[#allocation3 + $0x8] sm:$0xff] }
 0x128   :  { %v413_v16 = vpop.trf.xlu0  ;;  %v927_v37 = vld [vmem:[#allocation3] sm:$0xff]  ;;  %v604_v44 = vld [vmem:[#allocation2 + $0x10] ss:$2 sm:$0xff]  ;;  %v662_v48 = vld [vmem:[#allocation2 + $0x11] ss:$2 sm:$0xff] }
 0x129   :  { %461 = vst.msk [vmem:[#allocation2 + $0x28] sm:$0xff] %vm91_vm0, %v413_v16  ;;  %224 = vxpose.xlu1.b32.cont [4/8] (short) (narrow) %v872_v49, 8  ;;  %547 = vst.msk [vmem:[#allocation3] sm:$0xff] %vm91_vm0, %v546_v39  ;;  %v932_v40 = vld [vmem:[#allocation3 + $0x38] sm:$0xff] }
 0x12a   :  { %344 = vst.msk [vmem:[#allocation3 + $0x38] sm:$0xff] %vm91_vm0, %v343_v26 }
 0x12c   :  { %v414_v41 = vpop.trf.xlu0 }
 0x12d   :  { %462 = vst.msk [vmem:[#allocation2 + $0x30] sm:$0xff] %vm91_vm0, %v414_v41  ;;  %225 = vxpose.xlu1.b32.cont [5/8] (short) (narrow) %v884_v60, 8 }
 0x130   :  { %v415_v42 = vpop.trf.xlu0  ;;  %v939_v43 = vld [vmem:[#allocation3] sm:$0xff] }
 0x131   :  { %v490_v46 = vld [vmem:[#allocation2 + $0x20] ss:$2 sm:$0xff]  ;;  %463 = vst.msk [vmem:[#allocation2 + $0x38] sm:$0xff] %vm91_vm0, %v415_v42  ;;  %226 = vxpose.xlu1.b32.cont [6/8] (short) (narrow) %v896_v7, 8  ;;  %605 = vst.msk [vmem:[#allocation3] sm:$0xff] %vm91_vm0, %v604_v44 }
 0x132   :  { %491 = vst.msk [vmem:[#allocation3 + $0x8] sm:$0xff] %vm91_vm0, %v490_v46  ;;  %v548_v52 = vld [vmem:[#allocation2 + $0x21] ss:$2 sm:$0xff] }
 0x134   :  { %v416_v47 = vpop.trf.xlu0 }
 0x135   :  { %464 = vst.msk [vmem:[#allocation2 + $0x40] sm:$0xff] %vm91_vm0, %v416_v47  ;;  %227 = vxpose.xlu1.b32.cont [7/8] (short) (narrow) %v219_v19, 8 }
 0x138   :  { %v417_v49 = vpop.trf.xlu0  ;;  %v620_v50 = vld [vmem:[#allocation3] sm:$0xff]  ;;  %v606_v59 = vld [vmem:[#allocation2 + $0x30] ss:$2 sm:$0xff] }
 0x139   :  { %v946_v51 = vld [vmem:[#allocation3 + $0x8] sm:$0xff]  ;;  %465 = vst.msk [vmem:[#allocation2 + $0x48] sm:$0xff] %vm91_vm0, %v417_v49  ;;  %228 = vxpose.xlu1.b32.end [8/8] (short) (narrow) %v220_v33, 8  ;;  %628 = vxpose.xlu0.b32.start [1/8] (short) (narrow) %v620_v50, 8  ;;  %663 = vst.msk [vmem:[#allocation3] sm:$0xff] %vm91_vm0, %v662_v48  ;;  %v352_v33 = vld [vmem:[#allocation3 + $0x38] sm:$0xff] }
 0x13a   :  { %549 = vst.msk [vmem:[#allocation3 + $0x8] sm:$0xff] %vm91_vm0, %v548_v52 }
 0x13c   :  { %v418_v53 = vpop.trf.xlu0 }
 0x13d   :  { %466 = vst.msk [vmem:[#allocation2 + $0x50] sm:$0xff] %vm91_vm0, %v418_v53  ;;  %287 = vxpose.xlu1.b32.start [1/8] (short) (narrow) %v840_v22, 8  ;;  %v664_v22 = vld [vmem:[#allocation2 + $0x31] ss:$2 sm:$0xff] }
 0x140   :  { %v419_v55 = vpop.trf.xlu0  ;;  %v492_v57 = vld [vmem:[#allocation2 + $0x40] ss:$2 sm:$0xff]  ;;  %v550_v0 = vld [vmem:[#allocation2 + $0x41] ss:$2 sm:$0xff] }
 0x141   :  { %v953_v58 = vld [vmem:[#allocation3 + $0x8] sm:$0xff]  ;;  %467 = vst.msk [vmem:[#allocation2 + $0x58] sm:$0xff] %vm91_vm0, %v419_v55  ;;  %288 = vxpose.xlu1.b32.cont [2/8] (short) (narrow) %v856_v34, 8  ;;  %493 = vst.msk [vmem:[#allocation3 + $0x10] sm:$0xff] %vm91_vm0, %v492_v57 }
 0x142   :  { %607 = vst.msk [vmem:[#allocation3 + $0x8] sm:$0xff] %vm91_vm0, %v606_v59 }
 0x144   :  { %v420_v60 = vpop.trf.xlu0 }
 0x145   :  { %468 = vst.msk [vmem:[#allocation2 + $0x60] sm:$0xff] %vm91_vm0, %v420_v60  ;;  %289 = vxpose.xlu1.b32.cont [3/8] (short) (narrow) %v866_v45, 8  ;;  %v348_v45 = vld [vmem:[#allocation3 + $0x18] sm:$0xff] }
 0x148   :  { %v421_v61 = vpop.trf.xlu0  ;;  %v961_v63 = vld [vmem:[#allocation3 + $0x10] sm:$0xff] }
 0x149   :  { %v621_v62 = vld [vmem:[#allocation3 + $0x8] sm:$0xff]  ;;  %469 = vst.msk [vmem:[#allocation2 + $0x68] sm:$0xff] %vm91_vm0, %v421_v61  ;;  %290 = vxpose.xlu1.b32.cont [4/8] (short) (narrow) %v878_v56, 8  ;;  %551 = vst.msk [vmem:[#allocation3 + $0x10] sm:$0xff] %vm91_vm0, %v550_v0  ;;  %v608_v4 = vld [vmem:[#allocation2 + $0x50] ss:$2 sm:$0xff] }
 0x14a   :  { %629 = vxpose.xlu0.b32.cont [2/8] (short) (narrow) %v621_v62, 8  ;;  %665 = vst.msk [vmem:[#allocation3 + $0x8] sm:$0xff] %vm91_vm0, %v664_v22 }
 0x14c   :  { %v422_v34 = vpop.trf.xlu0 }
 0x14d   :  { %470 = vst.msk [vmem:[#allocation2 + $0x70] sm:$0xff] %vm91_vm0, %v422_v34  ;;  %291 = vxpose.xlu1.b32.cont [5/8] (short) (narrow) %v890_v3, 8  ;;  %v666_v3 = vld [vmem:[#allocation2 + $0x51] ss:$2 sm:$0xff] }
 0x150   :  { %v423_v1 = vpop.trf.xlu0  ;;  %v969_v2 = vld [vmem:[#allocation3 + $0x10] sm:$0xff]  ;;  %v494_v5 = vld [vmem:[#allocation2 + $0x60] ss:$2 sm:$0xff]  ;;  %v552_v9 = vld [vmem:[#allocation2 + $0x61] ss:$2 sm:$0xff] }
 0x151   :  { %471 = vst.msk [vmem:[#allocation2 + $0x78] sm:$0xff] %vm91_vm0, %v423_v1  ;;  %292 = vxpose.xlu1.b32.cont [6/8] (short) (narrow) %v902_v14, 8  ;;  %609 = vst.msk [vmem:[#allocation3 + $0x10] sm:$0xff] %vm91_vm0, %v608_v4 }
 0x152   :  { %495 = vst.msk [vmem:[#allocation3 + $0x18] sm:$0xff] %vm91_vm0, %v494_v5 }
 0x154   :  { %v440_v56 = vpop.trf.xlu0 }
 0x155   :  { %472 = vst.msk [vmem:[#allocation2 + $0x80] sm:$0xff] %vm91_vm0, %v440_v56  ;;  %293 = vxpose.xlu1.b32.cont [7/8] (short) (narrow) %v912_v28, 8 }
 0x158   :  { %v441_v6 = vpop.trf.xlu0  ;;  %v622_v7 = vld [vmem:[#allocation3 + $0x10] sm:$0xff] }
 0x159   :  { %v977_v8 = vld [vmem:[#allocation3 + $0x18] sm:$0xff]  ;;  %473 = vst.msk [vmem:[#allocation2 + $0x88] sm:$0xff] %vm91_vm0, %v441_v6  ;;  %294 = vxpose.xlu1.b32.end [8/8] (short) (narrow) %v932_v40, 8  ;;  %630 = vxpose.xlu0.b32.cont [3/8] (short) (narrow) %v622_v7, 8  ;;  %667 = vst.msk [vmem:[#allocation3 + $0x10] sm:$0xff] %vm91_vm0, %v666_v3 }
 0x15a   :  { %553 = vst.msk [vmem:[#allocation3 + $0x18] sm:$0xff] %vm91_vm0, %v552_v9  ;;  %v610_v14 = vld [vmem:[#allocation2 + $0x70] ss:$2 sm:$0xff]  ;;  %v668_v18 = vld [vmem:[#allocation2 + $0x71] ss:$2 sm:$0xff] }
 0x15c   :  { %v442_v10 = vpop.trf.xlu0 }
 0x15d   :  { %474 = vst.msk [vmem:[#allocation2 + $0x90] sm:$0xff] %vm91_vm0, %v442_v10  ;;  %353 = vxpose.xlu1.b32.start [1/8] (short) (narrow) %v919_v30, 8 }
 0x160   :  { %v443_v12 = vpop.trf.xlu0  ;;  %v496_v15 = vld [vmem:[#allocation2 + $0x80] ss:$2 sm:$0xff]  ;;  %v554_v23 = vld [vmem:[#allocation2 + $0x81] ss:$2 sm:$0xff] }
 0x161   :  { %v985_v13 = vld [vmem:[#allocation3 + $0x18] sm:$0xff]  ;;  %475 = vst.msk [vmem:[#allocation2 + $0x98] sm:$0xff] %vm91_vm0, %v443_v12  ;;  %354 = vxpose.xlu1.b32.cont [2/8] (short) (narrow) %v937_v38, 8  ;;  %497 = vst.msk [vmem:[#allocation3 + $0x20] sm:$0xff] %vm91_vm0, %v496_v15 }
 0x162   :  { %611 = vst.msk [vmem:[#allocation3 + $0x18] sm:$0xff] %vm91_vm0, %v610_v14 }
 0x164   :  { %v444_v17 = vpop.trf.xlu0 }
 0x165   :  { %476 = vst.msk [vmem:[#allocation2 + $0xa0] sm:$0xff] %vm91_vm0, %v444_v17  ;;  %355 = vxpose.xlu1.b32.cont [3/8] (short) (narrow) %v347_v54, 8 }
 0x168   :  { %v445_v19 = vpop.trf.xlu0  ;;  %v508_v21 = vld [vmem:[#allocation3 + $0x20] sm:$0xff]  ;;  %v612_v30 = vld [vmem:[#allocation2 + $0x90] ss:$2 sm:$0xff]  ;;  %v670_v35 = vld [vmem:[#allocation2 + $0x91] ss:$2 sm:$0xff] }
 0x169   :  { %v623_v20 = vld [vmem:[#allocation3 + $0x18] sm:$0xff]  ;;  %477 = vst.msk [vmem:[#allocation2 + $0xa8] sm:$0xff] %vm91_vm0, %v445_v19  ;;  %356 = vxpose.xlu1.b32.cont [4/8] (short) (narrow) %v348_v45, 8  ;;  %555 = vst.msk [vmem:[#allocation3 + $0x20] sm:$0xff] %vm91_vm0, %v554_v23 }
 0x16a   :  { %631 = vxpose.xlu0.b32.cont [4/8] (short) (narrow) %v623_v20, 8  ;;  %669 = vst.msk [vmem:[#allocation3 + $0x18] sm:$0xff] %vm91_vm0, %v668_v18 }
 0x16c   :  { %v446_v24 = vpop.trf.xlu0 }
 0x16d   :  { %478 = vst.msk [vmem:[#allocation2 + $0xb0] sm:$0xff] %vm91_vm0, %v446_v24  ;;  %357 = vxpose.xlu1.b32.cont [5/8] (short) (narrow) %v349_v11, 8 }
 0x170   :  { %v447_v27 = vpop.trf.xlu0  ;;  %v498_v28 = vld [vmem:[#allocation2 + $0xa0] ss:$2 sm:$0xff]  ;;  %v556_v16 = vld [vmem:[#allocation2 + $0xa1] ss:$2 sm:$0xff] }
 0x171   :  { %v996_v29 = vld [vmem:[#allocation3 + $0x20] sm:$0xff]  ;;  %479 = vst.msk [vmem:[#allocation2 + $0xb8] sm:$0xff] %vm91_vm0, %v447_v27  ;;  %358 = vxpose.xlu1.b32.cont [6/8] (short) (narrow) %v350_v25, 8  ;;  %499 = vst.msk [vmem:[#allocation3 + $0x28] sm:$0xff] %vm91_vm0, %v498_v28  ;;  %v681_v4 = vld [vmem:[#allocation3 + $0x18] sm:$0xff] }
 0x172   :  { %613 = vst.msk [vmem:[#allocation3 + $0x20] sm:$0xff] %vm91_vm0, %v612_v30 }
 0x174   :  { %v448_v31 = vpop.trf.xlu0 }
 0x175   :  { %480 = vst.msk [vmem:[#allocation2 + $0xc0] sm:$0xff] %vm91_vm0, %v448_v31  ;;  %359 = vxpose.xlu1.b32.cont [7/8] (short) (narrow) %v351_v32, 8 }
 0x178   :  { %v509_v36 = vld [vmem:[#allocation3 + $0x28] sm:$0xff]  ;;  %v449_v39 = vpop.trf.xlu0  ;;  %v614_v44 = vld [vmem:[#allocation2 + $0xb0] ss:$2 sm:$0xff] }
 0x179   :  { %v624_v40 = vld [vmem:[#allocation3 + $0x20] sm:$0xff]  ;;  %557 = vst.msk [vmem:[#allocation3 + $0x28] sm:$0xff] %vm91_vm0, %v556_v16  ;;  %481 = vst.msk [vmem:[#allocation2 + $0xc8] sm:$0xff] %vm91_vm0, %v449_v39  ;;  %360 = vxpose.xlu1.b32.end [8/8] (short) (narrow) %v352_v33, 8 }
 0x17a   :  { %632 = vxpose.xlu0.b32.cont [5/8] (short) (narrow) %v624_v40, 8  ;;  %671 = vst.msk [vmem:[#allocation3 + $0x20] sm:$0xff] %vm91_vm0, %v670_v35 }
 0x17c   :  { %v450_v26 = vpop.trf.xlu0 }
 0x17d   :  { %482 = vst.msk [vmem:[#allocation2 + $0xd0] sm:$0xff] %vm91_vm0, %v450_v26  ;;  %512 = vxpose.xlu1.b32.start [1/8] (short) (narrow) %v927_v37, 8  ;;  %v171_v41 = vpop.trf.xlu1  ;;  %v672_v37 = vld [vmem:[#allocation2 + $0xb1] ss:$2 sm:$0xff] }
 0x17e   :  { %188 = vst.msk [vmem:[#allocation7] sm:$0xf] %vm187_vm1, %v171_v41 }
 0x180   :  { %v451_v38 = vpop.trf.xlu0  ;;  %v567_v42 = vld [vmem:[#allocation3 + $0x28] sm:$0xff] }
 0x181   :  { %v500_v46 = vld [vmem:[#allocation2 + $0xc0] ss:$2 sm:$0xff]  ;;  %483 = vst.msk [vmem:[#allocation2 + $0xd8] sm:$0xff] %vm91_vm0, %v451_v38  ;;  %513 = vxpose.xlu1.b32.cont [2/8] (short) (narrow) %v946_v51, 8  ;;  %615 = vst.msk [vmem:[#allocation3 + $0x28] sm:$0xff] %vm91_vm0, %v614_v44 }
 0x182   :  { %501 = vst.msk [vmem:[#allocation3 + $0x30] sm:$0xff] %vm91_vm0, %v500_v46  ;;  %v558_v52 = vld [vmem:[#allocation2 + $0xc1] ss:$2 sm:$0xff] }
 0x183   :  { %v682_v5 = vld [vmem:[#allocation3 + $0x20] sm:$0xff] }
 0x184   :  { %v452_v47 = vpop.trf.xlu0 }
 0x185   :  { %484 = vst.msk [vmem:[#allocation2 + $0xe0] sm:$0xff] %vm91_vm0, %v452_v47  ;;  %514 = vxpose.xlu1.b32.cont [3/8] (short) (narrow) %v961_v63, 8 }
 0x188   :  { %v453_v48 = vpop.trf.xlu0  ;;  %v625_v49 = vld [vmem:[#allocation3 + $0x28] sm:$0xff]  ;;  %v616_v54 = vld [vmem:[#allocation2 + $0xd0] ss:$2 sm:$0xff]  ;;  %v674_v59 = vld [vmem:[#allocation2 + $0xd1] ss:$2 sm:$0xff] }
 0x189   :  { %v510_v50 = vld [vmem:[#allocation3 + $0x30] sm:$0xff]  ;;  %485 = vst.msk [vmem:[#allocation2 + $0xe8] sm:$0xff] %vm91_vm0, %v453_v48  ;;  %515 = vxpose.xlu1.b32.cont [4/8] (short) (narrow) %v977_v8, 8  ;;  %633 = vxpose.xlu0.b32.cont [6/8] (short) (narrow) %v625_v49, 8  ;;  %673 = vst.msk [vmem:[#allocation3 + $0x28] sm:$0xff] %vm91_vm0, %v672_v37 }
 0x18a   :  { %559 = vst.msk [vmem:[#allocation3 + $0x30] sm:$0xff] %vm91_vm0, %v558_v52 }
 0x18c   :  { %v454_v51 = vpop.trf.xlu0 }
 0x18d   :  { %516 = vxpose.xlu1.b32.cont [5/8] (short) (narrow) %v508_v21, 8  ;;  %486 = vst.msk [vmem:[#allocation2 + $0xf0] sm:$0xff] %vm91_vm0, %v454_v51 }
 0x190   :  { %v502_v55 = vld [vmem:[#allocation2 + $0xe0] ss:$2 sm:$0xff]  ;;  %v455_v57 = vpop.trf.xlu0  ;;  %v560_v61 = vld [vmem:[#allocation2 + $0xe1] ss:$2 sm:$0xff] }
 0x191   :  { %v568_v53 = vld [vmem:[#allocation3 + $0x30] sm:$0xff]  ;;  %517 = vxpose.xlu1.b32.cont [6/8] (short) (narrow) %v509_v36, 8  ;;  %503 = vst.msk [vmem:[#allocation3 + $0x38] sm:$0xff] %vm91_vm0, %v502_v55  ;;  %487 = vst.msk [vmem:[#allocation2 + $0xf8] sm:$0xff] %vm91_vm0, %v455_v57  ;;  %v683_v56 = vld [vmem:[#allocation3 + $0x28] sm:$0xff] }
 0x192   :  { %617 = vst.msk [vmem:[#allocation3 + $0x30] sm:$0xff] %vm91_vm0, %v616_v54 }
 0x195   :  { %518 = vxpose.xlu1.b32.cont [7/8] (short) (narrow) %v510_v50, 8 }
 0x198   :  { %v511_v22 = vld [vmem:[#allocation3 + $0x38] sm:$0xff] }
 0x199   :  { %v626_v60 = vld [vmem:[#allocation3 + $0x30] sm:$0xff]  ;;  %519 = vxpose.xlu1.b32.end [8/8] (short) (narrow) %v511_v22, 8  ;;  %561 = vst.msk [vmem:[#allocation3 + $0x38] sm:$0xff] %vm91_vm0, %v560_v61 }
 0x19a   :  { %634 = vxpose.xlu0.b32.cont [7/8] (short) (narrow) %v626_v60, 8  ;;  %675 = vst.msk [vmem:[#allocation3 + $0x30] sm:$0xff] %vm91_vm0, %v674_v59  ;;  %v618_v63 = vld [vmem:[#allocation2 + $0xf0] ss:$2 sm:$0xff]  ;;  %v676_v34 = vld [vmem:[#allocation2 + $0xf1] ss:$2 sm:$0xff] }
 0x19d   :  { %570 = vxpose.xlu1.b32.start [1/8] (short) (narrow) %v939_v43, 8  ;;  %v237_v62 = vpop.trf.xlu1  ;;  %v678_v43 = vld [vmem:[#allocation3] sm:$0xff] }
 0x19e   :  { %254 = vst.msk [vmem:[#allocation7 + $0x4] sm:$0xf] %vm187_vm1, %v237_v62 }
 0x1a0   :  { %v569_v0 = vld [vmem:[#allocation3 + $0x38] sm:$0xff] }
 0x1a1   :  { %571 = vxpose.xlu1.b32.cont [2/8] (short) (narrow) %v953_v58, 8  ;;  %619 = vst.msk [vmem:[#allocation3 + $0x38] sm:$0xff] %vm91_vm0, %v618_v63  ;;  %v679_v58 = vld [vmem:[#allocation3 + $0x8] sm:$0xff]  ;;  %v684_v3 = vld [vmem:[#allocation3 + $0x30] sm:$0xff] }
 0x1a5   :  { %572 = vxpose.xlu1.b32.cont [3/8] (short) (narrow) %v969_v2, 8  ;;  %v680_v2 = vld [vmem:[#allocation3 + $0x10] sm:$0xff] }
 0x1a8   :  { %v627_v45 = vld [vmem:[#allocation3 + $0x38] sm:$0xff] }
 0x1a9   :  { %573 = vxpose.xlu1.b32.cont [4/8] (short) (narrow) %v985_v13, 8  ;;  %635 = vxpose.xlu0.b32.end [8/8] (short) (narrow) %v627_v45, 8  ;;  %677 = vst.msk [vmem:[#allocation3 + $0x38] sm:$0xff] %vm91_vm0, %v676_v34 }
 0x1ad   :  { %574 = vxpose.xlu1.b32.cont [5/8] (short) (narrow) %v996_v29, 8 }
 0x1b0   :  { %v685_v6 = vld [vmem:[#allocation3 + $0x38] sm:$0xff] }
 0x1b1   :  { %575 = vxpose.xlu1.b32.cont [6/8] (short) (narrow) %v567_v42, 8 }
 0x1b5   :  { %576 = vxpose.xlu1.b32.cont [7/8] (short) (narrow) %v568_v53, 8 }
 0x1b9   :  { %577 = vxpose.xlu1.b32.end [8/8] (short) (narrow) %v569_v0, 8 }
 0x1bd   :  { %686 = vxpose.xlu1.b32.start [1/8] (short) (narrow) %v678_v43, 8  ;;  %v303_v1 = vpop.trf.xlu1 }
 0x1be   :  { %320 = vst.msk [vmem:[#allocation7 + $0x8] sm:$0xf] %vm187_vm1, %v303_v1 }
 0x1c1   :  { %687 = vxpose.xlu1.b32.cont [2/8] (short) (narrow) %v679_v58, 8 }
 0x1c5   :  { %688 = vxpose.xlu1.b32.cont [3/8] (short) (narrow) %v680_v2, 8 }
 0x1c9   :  { %689 = vxpose.xlu1.b32.cont [4/8] (short) (narrow) %v681_v4, 8 }
 0x1cd   :  { %690 = vxpose.xlu1.b32.cont [5/8] (short) (narrow) %v682_v5, 8 }
 0x1d1   :  { %691 = vxpose.xlu1.b32.cont [6/8] (short) (narrow) %v683_v56, 8 }
 0x1d5   :  { %692 = vxpose.xlu1.b32.cont [7/8] (short) (narrow) %v684_v3, 8 }
 0x1d9   :  { %693 = vxpose.xlu1.b32.end [8/8] (short) (narrow) %v685_v6, 8 }
 0x1dd   :  { %v369_v7 = vpop.trf.xlu1 }
 0x1de   :  { %386 = vst.msk [vmem:[#allocation7 + $0xc] sm:$0xf] %vm187_vm1, %v369_v7 }
 0x1fd   :  { %v528_v8 = vpop.trf.xlu1 }
 0x1fe   :  { %545 = vst.msk [vmem:[#allocation7 + $0x10] sm:$0xf] %vm187_vm1, %v528_v8 }
 0x20d   :  { %v644_v9 = vpop.trf.xlu0 }
 0x20e   :  { %661 = vst.msk [vmem:[#allocation7 + $0x18] sm:$0xf] %vm187_vm1, %v644_v9 }
 0x21d   :  { %v586_v10 = vpop.trf.xlu1 }
 0x21e   :  { %603 = vst.msk [vmem:[#allocation7 + $0x14] sm:$0xf] %vm187_vm1, %v586_v10 }
 0x23d   :  { %v702_v11 = vpop.trf.xlu1 }
 0x23e   :  { %719 = vst.msk [vmem:[#allocation7 + $0x1c] sm:$0xf] %vm187_vm1, %v702_v11 }
 0x23f   :  { %779 = shalt.err (!%p776_p12)
}
 0x240   :  { %s780_s24 = scalar_lea.hbm %s1051_s1, 512 }
 0x241   :  { %p781_p13 = scmp.ne.s32.totalorder %s1051_s1, %s780_s24  ;;  %p784_p0 = scmp.lt.u32.totalorder %s780_s24, %s1051_s1 }
 0x243   :  { %p786_p1 = pnand %p784_p0, %p781_p13 }
 0x245   :  { %789 = shalt.err (!%p786_p1)
}
 0x246   :  { %s798_s29 = smov 64   ;;  %s799_s30 = smov 4  }
 0x247   :  { %731 = dma.vmem_to_hbm [thread:$0]  %s726_s20, 512, %s1051_s1, [#allocation6], %s798_s29, %s798_s29, %s799_s30  }
 0x248   :  { %792 = dma.done.wait [#allocation6], 512  }
 0x249   :  { %793 = vsyncadd [#allocation6], 4294966784 }
 0x24a   :  { %735 = vsyncpa [#allocation5], 1 }
 0x24b   :  { %736 = vsyncpa [#allocation6], 1 }

</bundles_post_ra>
